<compile_context>
chip_gen: v7x
topology: tpu7x:2x2x1
jax: 0.10.0
libtpu: 0.0.40
codegen_flags: <defaults>
</compile_context>

<pallas_src>
import functools

import jax
import jax.numpy as jnp
from jax.experimental import pallas as pl
from jax.experimental.pallas import tpu as pltpu

EPS = 1e-5  # PyTorch BatchNorm1d default eps


def _round_up(x, m):
    return (x + m - 1) // m * m


# ---------------------------------------------------------------------------
# Fused kernel.
#   x_ref  : windowed: (1, Ls, Cin) halo window   |  fallback: (1, Lp, Cin)
#   w1_ref : (k*Cin,      Cout_pad)   BN-folded conv1 weight
#   w2_ref : (k*Cout_pad, Cout_pad)   conv2 weight
#   w3_ref : (k*Cout_pad, Cout_pad)   conv3 weight
#   ws_ref : (Cin,        Cout_pad)   1x1 skip-conv weight
#   b_ref  : (4, Cout_pad) f32        folded biases [conv1, conv2, conv3, skip]
#   o_ref  : (1, tL, Cout_pad)
#   h1_ref : (tL+4*pad, Cout_pad)  VMEM scratch (compute dtype)
#   h2_ref : (tL+2*pad, Cout_pad)  VMEM scratch (compute dtype)
# ---------------------------------------------------------------------------
def fused_block_kernel(x_ref, w1_ref, w2_ref, w3_ref, ws_ref, b_ref,
                       o_ref, h1_ref, h2_ref,
                       *, k, tL, L, pad, Ls, windowed):
    l = pl.program_id(1)
    l0 = l * tL                        # first output row of this tile
    L1 = tL + 4 * pad                  # conv1 rows needed by conv2
    L2 = tL + 2 * pad                  # conv2 rows needed by conv3

    if windowed:
        xs = x_ref[0]                                          # (Ls, Cin)
    else:
        xs = x_ref[0, pl.ds(pl.multiple_of(l0, 8), Ls), :]     # (Ls, Cin)

    cdt = xs.dtype
    b = b_ref[...]                                             # (4, Cout_pad)
    cin = xs.shape[1]
    cpad = w1_ref.shape[1]

    def conv(src, w_ref, bias_row, out_len, kk, c_in):
        """Conv + folded BN/bias + ReLU; f32 accumulation on the MXU."""
        if kk == 1:
            acc = jnp.dot(src[0:out_len, :], w_ref[...],
                          preferred_element_type=jnp.float32)
        elif c_in >= 128:
            # k accumulating dots: contraction slices are 128-aligned, no
            # lane-concat copy of large pieces.
            acc = jnp.dot(src[0:out_len, :], w_ref[0:c_in, :],
                          preferred_element_type=jnp.float32)
            for d in range(1, kk):
                acc = acc + jnp.dot(src[d:d + out_len, :],
                                    w_ref[d * c_in:(d + 1) * c_in, :],
                                    preferred_element_type=jnp.float32)
        else:
            # small C: im2col concat is a cheap, single MXU push
            unf = jnp.concatenate(
                [src[d:d + out_len, :] for d in range(kk)], axis=-1)
            acc = jnp.dot(unf, w_ref[...], preferred_element_type=jnp.float32)
        return jnp.maximum(acc + bias_row, 0.0)

    # conv1
    h1_ref[...] = conv(xs, w1_ref, b[0:1, :], L1, k, cin).astype(cdt)

    # Rows of h1/h2 whose original position lies outside [0, L) must be the
    # zeros PyTorch's padding would feed into the next conv.  Only the first
    # and last L tiles can contain such rows -> gate the mask with pl.when.
    edge_possible = (pad > 0) or (L % tL != 0)
    if edge_possible:
        needs_mask = jnp.logical_or(l0 - 2 * pad < 0, l0 + tL + 2 * pad > L)

        @pl.when(needs_mask)
        def _():
            pos = (l0 - 2 * pad) + jax.lax.broadcasted_iota(
                jnp.int32, (L1, 1), 0)
            ok = jnp.logical_and(pos >= 0, pos < L)
            h1_ref[...] = jnp.where(ok, h1_ref[...], 0).astype(cdt)

    # conv2
    h2_ref[...] = conv(h1_ref[...], w2_ref, b[1:2, :], L2, k, cpad).astype(cdt)

    if edge_possible:
        @pl.when(needs_mask)
        def _():
            pos = (l0 - pad) + jax.lax.broadcasted_iota(jnp.int32, (L2, 1), 0)
            ok = jnp.logical_and(pos >= 0, pos < L)
            h2_ref[...] = jnp.where(ok, h2_ref[...], 0).astype(cdt)

    # conv3 (valid output rows only) + separate-ReLU skip branch
    h3 = conv(h2_ref[...], w3_ref, b[2:3, :], tL, k, cpad)
    skip = conv(xs[3 * pad:3 * pad + tL, :], ws_ref, b[3:4, :], tL, 1, cin)

    o_ref[0] = (h3 + skip).astype(o_ref.dtype)


# ---------------------------------------------------------------------------
# Wrapper helpers.
# ---------------------------------------------------------------------------
def _fold_bn_pad(params, cin_pad, cout_pad):
    """Fold conv bias + eval-BN into weights; zero-pad channels as requested."""
    w, b, gamma, beta, mean, var = params          # w: (k, cin, cout)
    k, cin, cout = w.shape
    scale = gamma * jax.lax.rsqrt(var + EPS)       # (cout,)
    w = w * scale[None, None, :]
    bias = (b - mean) * scale + beta
    if cin_pad != cin or cout_pad != cout:
        w = jnp.pad(w, ((0, 0), (0, cin_pad - cin), (0, cout_pad - cout)))
        bias = jnp.pad(bias, ((0, cout_pad - cout),))
    return w.reshape(k * cin_pad, cout_pad), bias


def _vmem_capacity_bytes():
    try:
        cap = getattr(pltpu.get_tpu_info(), "vmem_capacity_bytes", None)
        if cap:
            return int(cap)
    except Exception:
        pass
    return 64 << 20        # conservative default (v7x per-TensorCore VMEM)


def _choose_l_tile(L, N, cin, cout_pad, vmem_bytes, max_l_tile):
    # Generation-aware target: v5e/v6e (128 MiB VMEM) -> 512 rows, v7x -> 256.
    target = 512 if vmem_bytes >= (100 << 20) else 256
    if max_l_tile is not None:
        target = max_l_tile
    # Rough per-row VMEM bytes: double-buffered in/out tiles + h1/h2 scratch.
    per_row = 2 * 4 * cin + 6 * 4 * cout_pad
    target = min(target, max(8, (vmem_bytes // 4) // max(per_row, 1)))
    tL = min(_round_up(L, 8), max(8, (target // 8) * 8))
    # v7x has 2 TensorCores sharing the parallel grid: keep >= 2 grid points.
    while N * (-(-L // tL)) < 2 and tL > 8:
        tL = max(8, ((tL // 2) // 8) * 8)
    return tL


def residual_block(x_nlc, params, *, mxu_dtype=None, max_l_tile=None):
    """x_nlc: (N, L, Cin) -> (N, L, Cout). Mirrors ResidualBlock.forward (eval)."""
    N, L, cin = x_nlc.shape
    k = params["conv1"][0].shape[0]
    assert k % 2 == 1, "even k_size changes PyTorch Conv1d output length"  # TODO(synk)
    pad = (k - 1) // 2
    hpad = 3 * pad

    cout = params["conv1"][0].shape[2]
    cout_pad = _round_up(cout, 128)          # lane-dense stores / full MXU N dim

    cdt = jnp.dtype(mxu_dtype) if mxu_dtype is not None else x_nlc.dtype

    w1, b1 = _fold_bn_pad(params["conv1"], cin, cout_pad)
    w2, b2 = _fold_bn_pad(params["conv2"], cout_pad, cout_pad)
    w3, b3 = _fold_bn_pad(params["conv3"], cout_pad, cout_pad)
    ws, bs = _fold_bn_pad(params["x_conv"], cin, cout_pad)
    b_all = jnp.stack([b1, b2, b3, bs]).astype(jnp.float32)   # (4, Cout_pad)
    w1, w2, w3, ws = (w.astype(cdt) for w in (w1, w2, w3, ws))

    vmem_bytes = _vmem_capacity_bytes()
    tL = _choose_l_tile(L, N, cin, cout_pad, vmem_bytes, max_l_tile)
    nL = -(-L // tL)                       # cdiv: ragged L handled by padding
    L_out = nL * tL

    Ls = _round_up(tL + 6 * pad, 8)        # sublane-aligned input halo window
    # hpad zeros left; ragged/halo/alignment zeros right.  Every (n, l) window
    # [l*tL, l*tL + Ls) of the padded input is then fully in bounds.
    Lp = L_out + 2 * hpad + (Ls - (tL + 6 * pad))
    xp = jnp.pad(x_nlc, ((0, 0), (hpad, Lp - hpad - L), (0, 0))).astype(cdt)

    L1, L2 = tL + 4 * pad, tL + 2 * pad

    flops = 2 * N * L_out * cout_pad * (k * cin + 2 * k * cout_pad + cin)
    bytes_accessed = (xp.size * xp.dtype.itemsize
                      + sum(w.size * w.dtype.itemsize for w in (w1, w2, w3, ws))
                      + b_all.size * 4
                      + N * L_out * cout_pad * jnp.dtype(x_nlc.dtype).itemsize)

    weight_specs = [
        pl.BlockSpec((k * cin, cout_pad), lambda n, l: (0, 0)),
        pl.BlockSpec((k * cout_pad, cout_pad), lambda n, l: (0, 0)),
        pl.BlockSpec((k * cout_pad, cout_pad), lambda n, l: (0, 0)),
        pl.BlockSpec((cin, cout_pad), lambda n, l: (0, 0)),
        pl.BlockSpec((4, cout_pad), lambda n, l: (0, 0)),
    ]

    def build_and_run(mode):
        windowed = mode != "full_row"
        if mode == "halo_mixed":
            x_spec = pl.BlockSpec((1, pl.Element(Ls), cin),
                                  lambda n, l: (n, l * tL, 0))
        elif mode == "halo_element":
            x_spec = pl.BlockSpec(
                (pl.Element(1), pl.Element(Ls), pl.Element(cin)),
                lambda n, l: (n, l * tL, 0))
        else:   # known-good fallback: whole padded row per batch element
            x_spec = pl.BlockSpec((1, Lp, cin), lambda n, l: (n, 0, 0))

        kern = functools.partial(fused_block_kernel, k=k, tL=tL, L=L, pad=pad,
                                 Ls=Ls, windowed=windowed)
        return pl.pallas_call(
            kern,
            out_shape=jax.ShapeDtypeStruct((N, L_out, cout_pad), x_nlc.dtype),
            grid=(N, nL),
            in_specs=[x_spec] + weight_specs,
            out_specs=pl.BlockSpec((1, tL, cout_pad), lambda n, l: (n, l, 0)),
            scratch_shapes=[pltpu.VMEM((L1, cout_pad), cdt),
                            pltpu.VMEM((L2, cout_pad), cdt)],
            compiler_params=pltpu.CompilerParams(
                dimension_semantics=("parallel", "parallel"),
                vmem_limit_bytes=int(min(vmem_bytes * 3 // 4, 128 << 20)),
            ),
            cost_estimate=pl.CostEstimate(
                flops=int(flops), transcendentals=0,
                bytes_accessed=int(bytes_accessed)),
        )(xp, w1, w2, w3, ws, b_all)

    out, last_err = None, None
    # Primary: element-indexed overlapping halo window (bounded per-step VMEM,
    # pipelined input DMA).  Fall back to the full-row spec if unsupported.
    for mode in ("halo_mixed", "halo_element", "full_row"):
        try:
            out = jax.block_until_ready(build_and_run(mode))
            break
        except Exception as e:          # TODO(synk): lowering-support fallback
            last_err = e
            out = None
    if out is None:
        raise last_err

    return out[:, :L, :cout]


# ---------------------------------------------------------------------------
# Deterministic synthetic parameter init (shapes per module __init__).
# ---------------------------------------------------------------------------
def init_cbr_params(key, in_ch, out_ch, k):
    k1, k2, k3, k4, k5, k6 = jax.random.split(key, 6)
    fan_in = in_ch * k
    w = jax.random.normal(k1, (k, in_ch, out_ch), jnp.float32) / jnp.sqrt(fan_in)
    b = 0.1 * jax.random.normal(k2, (out_ch,), jnp.float32)
    gamma = 1.0 + 0.1 * jax.random.normal(k3, (out_ch,), jnp.float32)
    beta = 0.1 * jax.random.normal(k4, (out_ch,), jnp.float32)
    run_mean = 0.1 * jax.random.normal(k5, (out_ch,), jnp.float32)
    run_var = 1.0 + 0.1 * jax.random.uniform(k6, (out_ch,), jnp.float32)
    return (w, b, gamma, beta, run_mean, run_var)


def init_residual_block(key, in_ch, out_ch, k_size):
    ks = jax.random.split(key, 4)
    return {
        "conv1": init_cbr_params(ks[0], in_ch, out_ch, k_size),
        "conv2": init_cbr_params(ks[1], out_ch, out_ch, k_size),
        "conv3": init_cbr_params(ks[2], out_ch, out_ch, k_size),
        "x_conv": init_cbr_params(ks[3], in_ch, out_ch, 1),
    }


# ---------------------------------------------------------------------------
# Pure-JAX reference (unfused, un-folded BN) for correctness check.
# ---------------------------------------------------------------------------
def ref_cbr(x, params):
    w, b, g, be, mu, v = params
    k = w.shape[0]
    pad = (k - 1) // 2
    L = x.shape[1]
    xp = jnp.pad(x, ((0, 0), (pad, pad), (0, 0)))
    y = sum(jnp.einsum("nlc,cd->nld", xp[:, dk:dk + L, :], w[dk]) for dk in range(k))
    y = y + b
    y = (y - mu) * jax.lax.rsqrt(v + EPS) * g + be
    return jnp.maximum(y, 0.0)


def ref_residual_block(x_nlc, params):
    h = ref_cbr(x_nlc, params["conv1"])
    h = ref_cbr(h, params["conv2"])
    h = ref_cbr(h, params["conv3"])
    return h + ref_cbr(x_nlc, params["x_conv"])


if __name__ == "__main__":
    N, in_ch, out_ch, L, k_size = 2, 4, 8, 16, 3
    key = jax.random.PRNGKey(0)
    kx, kx2, kp = jax.random.split(key, 3)

    # Module contract is (N, C, L); transpose to kernel layout (N, L, C).
    x_ncl = jax.random.normal(kx, (N, in_ch, L), jnp.float32)
    x_nlc = jnp.transpose(x_ncl, (0, 2, 1))
    params = init_residual_block(kp, in_ch, out_ch, k_size)

    # 1) f32 path, single L tile
    out_nlc = residual_block(x_nlc, params)
    jax.block_until_ready(out_nlc)
    ref_nlc = ref_residual_block(x_nlc, params)
    out_ncl = jnp.transpose(out_nlc, (0, 2, 1))
    assert out_ncl.shape == (N, out_ch, L)
    assert jnp.allclose(out_nlc, ref_nlc, atol=1e-4, rtol=1e-3), "f32 mismatch"

    # 2) multi-tile + ragged L (exercises halo windows and edge-only masking)
    L2 = 20
    x2_nlc = jnp.transpose(jax.random.normal(kx2, (N, in_ch, L2), jnp.float32),
                           (0, 2, 1))
    out2 = residual_block(x2_nlc, params, max_l_tile=8)
    jax.block_until_ready(out2)
    ref2 = ref_residual_block(x2_nlc, params)
    assert jnp.allclose(out2, ref2, atol=1e-4, rtol=1e-3), "tiled mismatch"

    # 3) bf16 MXU operands (v6e/v7x fast path), relaxed tolerance
    out_bf = residual_block(x_nlc, params, mxu_dtype=jnp.bfloat16)
    jax.block_until_ready(out_bf)
    assert jnp.allclose(out_bf, ref_nlc, atol=1e-1, rtol=1e-1), "bf16 mismatch"

    print("KERNEL_OK")
</pallas_src>

<mosaic_0001>
module attributes {stable_mosaic.version = 11 : i64} {
  func.func @fused_block_kernel(%arg0: i32, %arg1: i32, %arg2: memref<1x24x4xf32, #tpu.memory_space<vmem>>, %arg3: memref<12x128xf32, #tpu.memory_space<vmem>>, %arg4: memref<384x128xf32, #tpu.memory_space<vmem>>, %arg5: memref<384x128xf32, #tpu.memory_space<vmem>>, %arg6: memref<4x128xf32, #tpu.memory_space<vmem>>, %arg7: memref<4x128xf32, #tpu.memory_space<vmem>>, %arg8: memref<1x16x128xf32, #tpu.memory_space<vmem>>, %arg9: memref<20x128xf32, #tpu.memory_space<vmem>>, %arg10: memref<18x128xf32, #tpu.memory_space<vmem>>) attributes {dimension_semantics = [#tpu.dimension_semantics<parallel>, #tpu.dimension_semantics<parallel>], iteration_bounds = array<i64: 2, 1>, scalar_prefetch = 0 : i64, scratch_operands = 2 : i64, tpu.core_type = #tpu.core_type<tc>, window_params = [{transform_indices = @transform_0, window_bounds = array<i64: 1, 24, 4>, window_kind = #tpu.element_window<[0, 0, 0], [0, 0, 0]>}, {pipeline_mode = #tpu.pipeline_mode<synchronous>, transform_indices = @transform_1, window_bounds = array<i64: 12, 128>}, {pipeline_mode = #tpu.pipeline_mode<synchronous>, transform_indices = @transform_2, window_bounds = array<i64: 384, 128>}, {pipeline_mode = #tpu.pipeline_mode<synchronous>, transform_indices = @transform_3, window_bounds = array<i64: 384, 128>}, {pipeline_mode = #tpu.pipeline_mode<synchronous>, transform_indices = @transform_4, window_bounds = array<i64: 4, 128>}, {pipeline_mode = #tpu.pipeline_mode<synchronous>, transform_indices = @transform_5, window_bounds = array<i64: 4, 128>}, {transform_indices = @transform_6, window_bounds = array<i64: 1, 16, 128>}]} {
    %c16_i32 = arith.constant 16 : i32
    %0 = arith.muli %arg1, %c16_i32 : i32
    %c0 = arith.constant 0 : index
    %c0_0 = arith.constant 0 : index
    %c0_1 = arith.constant 0 : index
    %1 = vector.load %arg2[%c0, %c0_0, %c0_1] : memref<1x24x4xf32, #tpu.memory_space<vmem>>, vector<1x24x4xf32>
    %2 = vector.shape_cast %1 : vector<1x24x4xf32> to vector<24x4xf32>
    %c0_2 = arith.constant 0 : index
    %c0_3 = arith.constant 0 : index
    %3 = vector.load %arg7[%c0_2, %c0_3] : memref<4x128xf32, #tpu.memory_space<vmem>>, vector<4x128xf32>
    %4 = vector.extract_strided_slice %3 {offsets = [0, 0], sizes = [1, 128], strides = [1, 1]} : vector<4x128xf32> to vector<1x128xf32>
    %5 = vector.extract_strided_slice %2 {offsets = [0, 0], sizes = [20, 4], strides = [1, 1]} : vector<24x4xf32> to vector<20x4xf32>
    %6 = vector.extract_strided_slice %2 {offsets = [1, 0], sizes = [20, 4], strides = [1, 1]} : vector<24x4xf32> to vector<20x4xf32>
    %7 = vector.extract_strided_slice %2 {offsets = [2, 0], sizes = [20, 4], strides = [1, 1]} : vector<24x4xf32> to vector<20x4xf32>
    %8 = tpu.concatenate %5, %6, %7 in 1 : vector<20x4xf32>, vector<20x4xf32>, vector<20x4xf32> -> vector<20x12xf32>
    %c0_4 = arith.constant 0 : index
    %c0_5 = arith.constant 0 : index
    %9 = vector.load %arg3[%c0_4, %c0_5] : memref<12x128xf32, #tpu.memory_space<vmem>>, vector<12x128xf32>
    %cst = arith.constant dense<0.000000e+00> : vector<20x128xf32>
    %10 = tpu.matmul %8, %9, %cst {dimension_numbers = #tpu.dot_dimension_numbers<[1], [0], [0], [1], [0, 0, 1, 1], [], []>} : vector<20x12xf32>, vector<12x128xf32>, vector<20x128xf32> -> vector<20x128xf32>
    %11 = vector.broadcast %4 : vector<1x128xf32> to vector<20x128xf32>
    %12 = arith.addf %10, %11 : vector<20x128xf32>
    %cst_6 = arith.constant 0.000000e+00 : f32
    %13 = vector.broadcast %cst_6 : f32 to vector<20x128xf32>
    %14 = arith.maximumf %12, %13 : vector<20x128xf32>
    %c0_7 = arith.constant 0 : index
    %c0_8 = arith.constant 0 : index
    %15 = vector.load %arg9[%c0_7, %c0_8] : memref<20x128xf32, #tpu.memory_space<vmem>>, vector<20x128xf32>
    tpu.vector_store %arg9[%c0_7, %c0_8], %14 {strides = array<i32>} : memref<20x128xf32, #tpu.memory_space<vmem>>, vector<20x128xf32>,
    %c2_i32 = arith.constant 2 : i32
    %16 = arith.subi %0, %c2_i32 : i32
    %c0_i32 = arith.constant 0 : i32
    %17 = arith.cmpi slt, %16, %c0_i32 : i32
    %c16_i32_9 = arith.constant 16 : i32
    %18 = arith.addi %0, %c16_i32_9 : i32
    %c2_i32_10 = arith.constant 2 : i32
    %19 = arith.addi %18, %c2_i32_10 : i32
    %c16_i32_11 = arith.constant 16 : i32
    %20 = arith.cmpi sgt, %19, %c16_i32_11 : i32
    %21 = arith.ori %17, %20 : i1
    %22 = arith.extui %21 : i1 to i32
    %c0_i32_12 = arith.constant 0 : i32
    %23 = arith.cmpi ne, %22, %c0_i32_12 : i32
    scf.if %23 {
      %c2_i32_45 = arith.constant 2 : i32
      %73 = arith.subi %0, %c2_i32_45 : i32
      %74 = tpu.iota {dimensions = array<i32: 0>} : vector<20x1xi32>
      %75 = vector.broadcast %73 : i32 to vector<20x1xi32>
      %76 = arith.addi %75, %74 : vector<20x1xi32>
      %c0_i32_46 = arith.constant 0 : i32
      %77 = vector.broadcast %c0_i32_46 : i32 to vector<20x1xi32>
      %78 = arith.cmpi sge, %76, %77 : vector<20x1xi32>
      %c16_i32_47 = arith.constant 16 : i32
      %79 = vector.broadcast %c16_i32_47 : i32 to vector<20x1xi32>
      %80 = arith.cmpi slt, %76, %79 : vector<20x1xi32>
      %81 = arith.andi %78, %80 : vector<20x1xi1>
      %c0_48 = arith.constant 0 : index
      %c0_49 = arith.constant 0 : index
      %82 = vector.load %arg9[%c0_48, %c0_49] : memref<20x128xf32, #tpu.memory_space<vmem>>, vector<20x128xf32>
      %c0_i32_50 = arith.constant 0 : i32
      %83 = arith.sitofp %c0_i32_50 : i32 to f32
      %84 = vector.shape_cast %81 : vector<20x1xi1> to vector<20x1xi1>
      %85 = vector.broadcast %84 : vector<20x1xi1> to vector<20x128xi1>
      %86 = vector.broadcast %83 : f32 to vector<20x128xf32>
      %87 = arith.select %85, %82, %86 : vector<20x128xi1>, vector<20x128xf32>
      %c0_51 = arith.constant 0 : index
      %c0_52 = arith.constant 0 : index
      %88 = vector.load %arg9[%c0_51, %c0_52] : memref<20x128xf32, #tpu.memory_space<vmem>>, vector<20x128xf32>
      tpu.vector_store %arg9[%c0_51, %c0_52], %87 {strides = array<i32>} : memref<20x128xf32, #tpu.memory_space<vmem>>, vector<20x128xf32>,
    } else {
    }
    %c0_13 = arith.constant 0 : index
    %c0_14 = arith.constant 0 : index
    %24 = vector.load %arg9[%c0_13, %c0_14] : memref<20x128xf32, #tpu.memory_space<vmem>>, vector<20x128xf32>
    %25 = vector.extract_strided_slice %3 {offsets = [1, 0], sizes = [1, 128], strides = [1, 1]} : vector<4x128xf32> to vector<1x128xf32>
    %26 = vector.extract_strided_slice %24 {offsets = [0, 0], sizes = [18, 128], strides = [1, 1]} : vector<20x128xf32> to vector<18x128xf32>
    %c0_15 = arith.constant 0 : index
    %c0_16 = arith.constant 0 : index
    %27 = vector.load %arg4[%c0_15, %c0_16] : memref<384x128xf32, #tpu.memory_space<vmem>>, vector<128x128xf32>
    %cst_17 = arith.constant dense<0.000000e+00> : vector<18x128xf32>
    %28 = tpu.matmul %26, %27, %cst_17 {dimension_numbers = #tpu.dot_dimension_numbers<[1], [0], [0], [1], [0, 0, 1, 1], [], []>} : vector<18x128xf32>, vector<128x128xf32>, vector<18x128xf32> -> vector<18x128xf32>
    %29 = vector.extract_strided_slice %24 {offsets = [1, 0], sizes = [18, 128], strides = [1, 1]} : vector<20x128xf32> to vector<18x128xf32>
    %c128 = arith.constant 128 : index
    %c0_18 = arith.constant 0 : index
    %30 = vector.load %arg4[%c128, %c0_18] : memref<384x128xf32, #tpu.memory_space<vmem>>, vector<128x128xf32>
    %cst_19 = arith.constant dense<0.000000e+00> : vector<18x128xf32>
    %31 = tpu.matmul %29, %30, %cst_19 {dimension_numbers = #tpu.dot_dimension_numbers<[1], [0], [0], [1], [0, 0, 1, 1], [], []>} : vector<18x128xf32>, vector<128x128xf32>, vector<18x128xf32> -> vector<18x128xf32>
    %32 = arith.addf %28, %31 : vector<18x128xf32>
    %33 = vector.extract_strided_slice %24 {offsets = [2, 0], sizes = [18, 128], strides = [1, 1]} : vector<20x128xf32> to vector<18x128xf32>
    %c256 = arith.constant 256 : index
    %c0_20 = arith.constant 0 : index
    %34 = vector.load %arg4[%c256, %c0_20] : memref<384x128xf32, #tpu.memory_space<vmem>>, vector<128x128xf32>
    %cst_21 = arith.constant dense<0.000000e+00> : vector<18x128xf32>
    %35 = tpu.matmul %33, %34, %cst_21 {dimension_numbers = #tpu.dot_dimension_numbers<[1], [0], [0], [1], [0, 0, 1, 1], [], []>} : vector<18x128xf32>, vector<128x128xf32>, vector<18x128xf32> -> vector<18x128xf32>
    %36 = arith.addf %32, %35 : vector<18x128xf32>
    %37 = vector.broadcast %25 : vector<1x128xf32> to vector<18x128xf32>
    %38 = arith.addf %36, %37 : vector<18x128xf32>
    %cst_22 = arith.constant 0.000000e+00 : f32
    %39 = vector.broadcast %cst_22 : f32 to vector<18x128xf32>
    %40 = arith.maximumf %38, %39 : vector<18x128xf32>
    %c0_23 = arith.constant 0 : index
    %c0_24 = arith.constant 0 : index
    %41 = vector.load %arg10[%c0_23, %c0_24] : memref<18x128xf32, #tpu.memory_space<vmem>>, vector<18x128xf32>
    tpu.vector_store %arg10[%c0_23, %c0_24], %40 {strides = array<i32>} : memref<18x128xf32, #tpu.memory_space<vmem>>, vector<18x128xf32>,
    %42 = arith.extui %21 : i1 to i32
    %c0_i32_25 = arith.constant 0 : i32
    %43 = arith.cmpi ne, %42, %c0_i32_25 : i32
    scf.if %43 {
      %c1_i32 = arith.constant 1 : i32
      %73 = arith.subi %0, %c1_i32 : i32
      %74 = tpu.iota {dimensions = array<i32: 0>} : vector<18x1xi32>
      %75 = vector.broadcast %73 : i32 to vector<18x1xi32>
      %76 = arith.addi %75, %74 : vector<18x1xi32>
      %c0_i32_45 = arith.constant 0 : i32
      %77 = vector.broadcast %c0_i32_45 : i32 to vector<18x1xi32>
      %78 = arith.cmpi sge, %76, %77 : vector<18x1xi32>
      %c16_i32_46 = arith.constant 16 : i32
      %79 = vector.broadcast %c16_i32_46 : i32 to vector<18x1xi32>
      %80 = arith.cmpi slt, %76, %79 : vector<18x1xi32>
      %81 = arith.andi %78, %80 : vector<18x1xi1>
      %c0_47 = arith.constant 0 : index
      %c0_48 = arith.constant 0 : index
      %82 = vector.load %arg10[%c0_47, %c0_48] : memref<18x128xf32, #tpu.memory_space<vmem>>, vector<18x128xf32>
      %c0_i32_49 = arith.constant 0 : i32
      %83 = arith.sitofp %c0_i32_49 : i32 to f32
      %84 = vector.shape_cast %81 : vector<18x1xi1> to vector<18x1xi1>
      %85 = vector.broadcast %84 : vector<18x1xi1> to vector<18x128xi1>
      %86 = vector.broadcast %83 : f32 to vector<18x128xf32>
      %87 = arith.select %85, %82, %86 : vector<18x128xi1>, vector<18x128xf32>
      %c0_50 = arith.constant 0 : index
      %c0_51 = arith.constant 0 : index
      %88 = vector.load %arg10[%c0_50, %c0_51] : memref<18x128xf32, #tpu.memory_space<vmem>>, vector<18x128xf32>
      tpu.vector_store %arg10[%c0_50, %c0_51], %87 {strides = array<i32>} : memref<18x128xf32, #tpu.memory_space<vmem>>, vector<18x128xf32>,
    } else {
    }
    %c0_26 = arith.constant 0 : index
    %c0_27 = arith.constant 0 : index
    %44 = vector.load %arg10[%c0_26, %c0_27] : memref<18x128xf32, #tpu.memory_space<vmem>>, vector<18x128xf32>
    %45 = vector.extract_strided_slice %3 {offsets = [2, 0], sizes = [1, 128], strides = [1, 1]} : vector<4x128xf32> to vector<1x128xf32>
    %46 = vector.extract_strided_slice %44 {offsets = [0, 0], sizes = [16, 128], strides = [1, 1]} : vector<18x128xf32> to vector<16x128xf32>
    %c0_28 = arith.constant 0 : index
    %c0_29 = arith.constant 0 : index
    %47 = vector.load %arg5[%c0_28, %c0_29] : memref<384x128xf32, #tpu.memory_space<vmem>>, vector<128x128xf32>
    %cst_30 = arith.constant dense<0.000000e+00> : vector<16x128xf32>
    %48 = tpu.matmul %46, %47, %cst_30 {dimension_numbers = #tpu.dot_dimension_numbers<[1], [0], [0], [1], [0, 0, 1, 1], [], []>} : vector<16x128xf32>, vector<128x128xf32>, vector<16x128xf32> -> vector<16x128xf32>
    %49 = vector.extract_strided_slice %44 {offsets = [1, 0], sizes = [16, 128], strides = [1, 1]} : vector<18x128xf32> to vector<16x128xf32>
    %c128_31 = arith.constant 128 : index
    %c0_32 = arith.constant 0 : index
    %50 = vector.load %arg5[%c128_31, %c0_32] : memref<384x128xf32, #tpu.memory_space<vmem>>, vector<128x128xf32>
    %cst_33 = arith.constant dense<0.000000e+00> : vector<16x128xf32>
    %51 = tpu.matmul %49, %50, %cst_33 {dimension_numbers = #tpu.dot_dimension_numbers<[1], [0], [0], [1], [0, 0, 1, 1], [], []>} : vector<16x128xf32>, vector<128x128xf32>, vector<16x128xf32> -> vector<16x128xf32>
    %52 = arith.addf %48, %51 : vector<16x128xf32>
    %53 = vector.extract_strided_slice %44 {offsets = [2, 0], sizes = [16, 128], strides = [1, 1]} : vector<18x128xf32> to vector<16x128xf32>
    %c256_34 = arith.constant 256 : index
    %c0_35 = arith.constant 0 : index
    %54 = vector.load %arg5[%c256_34, %c0_35] : memref<384x128xf32, #tpu.memory_space<vmem>>, vector<128x128xf32>
    %cst_36 = arith.constant dense<0.000000e+00> : vector<16x128xf32>
    %55 = tpu.matmul %53, %54, %cst_36 {dimension_numbers = #tpu.dot_dimension_numbers<[1], [0], [0], [1], [0, 0, 1, 1], [], []>} : vector<16x128xf32>, vector<128x128xf32>, vector<16x128xf32> -> vector<16x128xf32>
    %56 = arith.addf %52, %55 : vector<16x128xf32>
    %57 = vector.broadcast %45 : vector<1x128xf32> to vector<16x128xf32>
    %58 = arith.addf %56, %57 : vector<16x128xf32>
    %cst_37 = arith.constant 0.000000e+00 : f32
    %59 = vector.broadcast %cst_37 : f32 to vector<16x128xf32>
    %60 = arith.maximumf %58, %59 : vector<16x128xf32>
    %61 = vector.extract_strided_slice %2 {offsets = [3, 0], sizes = [16, 4], strides = [1, 1]} : vector<24x4xf32> to vector<16x4xf32>
    %62 = vector.extract_strided_slice %3 {offsets = [3, 0], sizes = [1, 128], strides = [1, 1]} : vector<4x128xf32> to vector<1x128xf32>
    %c0_38 = arith.constant 0 : index
    %c0_39 = arith.constant 0 : index
    %63 = vector.load %arg6[%c0_38, %c0_39] : memref<4x128xf32, #tpu.memory_space<vmem>>, vector<4x128xf32>
    %cst_40 = arith.constant dense<0.000000e+00> : vector<16x128xf32>
    %64 = tpu.matmul %61, %63, %cst_40 {dimension_numbers = #tpu.dot_dimension_numbers<[1], [0], [0], [1], [0, 0, 1, 1], [], []>} : vector<16x4xf32>, vector<4x128xf32>, vector<16x128xf32> -> vector<16x128xf32>
    %65 = vector.broadcast %62 : vector<1x128xf32> to vector<16x128xf32>
    %66 = arith.addf %64, %65 : vector<16x128xf32>
    %cst_41 = arith.constant 0.000000e+00 : f32
    %67 = vector.broadcast %cst_41 : f32 to vector<16x128xf32>
    %68 = arith.maximumf %66, %67 : vector<16x128xf32>
    %69 = arith.addf %60, %68 : vector<16x128xf32>
    %c0_42 = arith.constant 0 : index
    %c0_43 = arith.constant 0 : index
    %c0_44 = arith.constant 0 : index
    %70 = vector.load %arg8[%c0_42, %c0_43, %c0_44] : memref<1x16x128xf32, #tpu.memory_space<vmem>>, vector<1x16x128xf32>
    %71 = vector.shape_cast %70 : vector<1x16x128xf32> to vector<16x128xf32>
    %72 = vector.shape_cast %69 : vector<16x128xf32> to vector<1x16x128xf32>
    tpu.vector_store %arg8[%c0_42, %c0_43, %c0_44], %72 {strides = array<i32>} : memref<1x16x128xf32, #tpu.memory_space<vmem>>, vector<1x16x128xf32>,
    return
  }
  func.func @transform_0(%arg0: i32, %arg1: i32) -> (i32, i32, i32) {
    %c16_i32 = arith.constant 16 : i32
    %0 = arith.muli %arg1, %c16_i32 : i32
    %c0_i32 = arith.constant 0 : i32
    %c0_i32_0 = arith.constant 0 : i32
    return %arg0, %0, %c0_i32 : i32, i32, i32
  }
  func.func @transform_1(%arg0: i32, %arg1: i32) -> (i32, i32) {
    %c0_i32 = arith.constant 0 : i32
    %c0_i32_0 = arith.constant 0 : i32
    %c0_i32_1 = arith.constant 0 : i32
    return %c0_i32, %c0_i32_0 : i32, i32
  }
  func.func @transform_2(%arg0: i32, %arg1: i32) -> (i32, i32) {
    %c0_i32 = arith.constant 0 : i32
    %c0_i32_0 = arith.constant 0 : i32
    %c0_i32_1 = arith.constant 0 : i32
    return %c0_i32, %c0_i32_0 : i32, i32
  }
  func.func @transform_3(%arg0: i32, %arg1: i32) -> (i32, i32) {
    %c0_i32 = arith.constant 0 : i32
    %c0_i32_0 = arith.constant 0 : i32
    %c0_i32_1 = arith.constant 0 : i32
    return %c0_i32, %c0_i32_0 : i32, i32
  }
  func.func @transform_4(%arg0: i32, %arg1: i32) -> (i32, i32) {
    %c0_i32 = arith.constant 0 : i32
    %c0_i32_0 = arith.constant 0 : i32
    %c0_i32_1 = arith.constant 0 : i32
    return %c0_i32, %c0_i32_0 : i32, i32
  }
  func.func @transform_5(%arg0: i32, %arg1: i32) -> (i32, i32) {
    %c0_i32 = arith.constant 0 : i32
    %c0_i32_0 = arith.constant 0 : i32
    %c0_i32_1 = arith.constant 0 : i32
    return %c0_i32, %c0_i32_0 : i32, i32
  }
  func.func @transform_6(%arg0: i32, %arg1: i32) -> (i32, i32, i32) {
    %c0_i32 = arith.constant 0 : i32
    %c0_i32_0 = arith.constant 0 : i32
    return %arg0, %arg1, %c0_i32 : i32, i32, i32
  }
}

module attributes {stable_mosaic.version = 11 : i64} {
  func.func @fused_block_kernel(%arg0: i32, %arg1: i32, %arg2: memref<1x24x4xf32, #tpu.memory_space<vmem>>, %arg3: memref<12x128xf32, #tpu.memory_space<vmem>>, %arg4: memref<384x128xf32, #tpu.memory_space<vmem>>, %arg5: memref<384x128xf32, #tpu.memory_space<vmem>>, %arg6: memref<4x128xf32, #tpu.memory_space<vmem>>, %arg7: memref<4x128xf32, #tpu.memory_space<vmem>>, %arg8: memref<1x16x128xf32, #tpu.memory_space<vmem>>, %arg9: memref<20x128xf32, #tpu.memory_space<vmem>>, %arg10: memref<18x128xf32, #tpu.memory_space<vmem>>) attributes {dimension_semantics = [#tpu.dimension_semantics<parallel>, #tpu.dimension_semantics<parallel>], iteration_bounds = array<i64: 2, 1>, scalar_prefetch = 0 : i64, scratch_operands = 2 : i64, tpu.core_type = #tpu.core_type<tc>, window_params = [{transform_indices = @transform_0, window_bounds = array<i64: 1, 24, 4>}, {pipeline_mode = #tpu.pipeline_mode<synchronous>, transform_indices = @transform_1, window_bounds = array<i64: 12, 128>}, {pipeline_mode = #tpu.pipeline_mode<synchronous>, transform_indices = @transform_2, window_bounds = array<i64: 384, 128>}, {pipeline_mode = #tpu.pipeline_mode<synchronous>, transform_indices = @transform_3, window_bounds = array<i64: 384, 128>}, {pipeline_mode = #tpu.pipeline_mode<synchronous>, transform_indices = @transform_4, window_bounds = array<i64: 4, 128>}, {pipeline_mode = #tpu.pipeline_mode<synchronous>, transform_indices = @transform_5, window_bounds = array<i64: 4, 128>}, {transform_indices = @transform_6, window_bounds = array<i64: 1, 16, 128>}]} {
    %c16_i32 = arith.constant 16 : i32
    %0 = arith.muli %arg1, %c16_i32 : i32
    %1 = tpu.assume_multiple %0, 8 : i32
    %c0 = arith.constant 0 : index
    %2 = arith.index_cast %1 : i32 to index
    %c0_0 = arith.constant 0 : index
    %3 = vector.load %arg2[%c0, %2, %c0_0] : memref<1x24x4xf32, #tpu.memory_space<vmem>>, vector<1x24x4xf32>
    %4 = vector.shape_cast %3 : vector<1x24x4xf32> to vector<24x4xf32>
    %c0_1 = arith.constant 0 : index
    %c0_2 = arith.constant 0 : index
    %5 = vector.load %arg7[%c0_1, %c0_2] : memref<4x128xf32, #tpu.memory_space<vmem>>, vector<4x128xf32>
    %6 = vector.extract_strided_slice %5 {offsets = [0, 0], sizes = [1, 128], strides = [1, 1]} : vector<4x128xf32> to vector<1x128xf32>
    %7 = vector.extract_strided_slice %4 {offsets = [0, 0], sizes = [20, 4], strides = [1, 1]} : vector<24x4xf32> to vector<20x4xf32>
    %8 = vector.extract_strided_slice %4 {offsets = [1, 0], sizes = [20, 4], strides = [1, 1]} : vector<24x4xf32> to vector<20x4xf32>
    %9 = vector.extract_strided_slice %4 {offsets = [2, 0], sizes = [20, 4], strides = [1, 1]} : vector<24x4xf32> to vector<20x4xf32>
    %10 = tpu.concatenate %7, %8, %9 in 1 : vector<20x4xf32>, vector<20x4xf32>, vector<20x4xf32> -> vector<20x12xf32>
    %c0_3 = arith.constant 0 : index
    %c0_4 = arith.constant 0 : index
    %11 = vector.load %arg3[%c0_3, %c0_4] : memref<12x128xf32, #tpu.memory_space<vmem>>, vector<12x128xf32>
    %cst = arith.constant dense<0.000000e+00> : vector<20x128xf32>
    %12 = tpu.matmul %10, %11, %cst {dimension_numbers = #tpu.dot_dimension_numbers<[1], [0], [0], [1], [0, 0, 1, 1], [], []>} : vector<20x12xf32>, vector<12x128xf32>, vector<20x128xf32> -> vector<20x128xf32>
    %13 = vector.broadcast %6 : vector<1x128xf32> to vector<20x128xf32>
    %14 = arith.addf %12, %13 : vector<20x128xf32>
    %cst_5 = arith.constant 0.000000e+00 : f32
    %15 = vector.broadcast %cst_5 : f32 to vector<20x128xf32>
    %16 = arith.maximumf %14, %15 : vector<20x128xf32>
    %c0_6 = arith.constant 0 : index
    %c0_7 = arith.constant 0 : index
    %17 = vector.load %arg9[%c0_6, %c0_7] : memref<20x128xf32, #tpu.memory_space<vmem>>, vector<20x128xf32>
    tpu.vector_store %arg9[%c0_6, %c0_7], %16 {strides = array<i32>} : memref<20x128xf32, #tpu.memory_space<vmem>>, vector<20x128xf32>,
    %c2_i32 = arith.constant 2 : i32
    %18 = arith.subi %0, %c2_i32 : i32
    %c0_i32 = arith.constant 0 : i32
    %19 = arith.cmpi slt, %18, %c0_i32 : i32
    %c16_i32_8 = arith.constant 16 : i32
    %20 = arith.addi %0, %c16_i32_8 : i32
    %c2_i32_9 = arith.constant 2 : i32
    %21 = arith.addi %20, %c2_i32_9 : i32
    %c16_i32_10 = arith.constant 16 : i32
    %22 = arith.cmpi sgt, %21, %c16_i32_10 : i32
    %23 = arith.ori %19, %22 : i1
    %24 = arith.extui %23 : i1 to i32
    %c0_i32_11 = arith.constant 0 : i32
    %25 = arith.cmpi ne, %24, %c0_i32_11 : i32
    scf.if %25 {
      %c2_i32_44 = arith.constant 2 : i32
      %75 = arith.subi %0, %c2_i32_44 : i32
      %76 = tpu.iota {dimensions = array<i32: 0>} : vector<20x1xi32>
      %77 = vector.broadcast %75 : i32 to vector<20x1xi32>
      %78 = arith.addi %77, %76 : vector<20x1xi32>
      %c0_i32_45 = arith.constant 0 : i32
      %79 = vector.broadcast %c0_i32_45 : i32 to vector<20x1xi32>
      %80 = arith.cmpi sge, %78, %79 : vector<20x1xi32>
      %c16_i32_46 = arith.constant 16 : i32
      %81 = vector.broadcast %c16_i32_46 : i32 to vector<20x1xi32>
      %82 = arith.cmpi slt, %78, %81 : vector<20x1xi32>
      %83 = arith.andi %80, %82 : vector<20x1xi1>
      %c0_47 = arith.constant 0 : index
      %c0_48 = arith.constant 0 : index
      %84 = vector.load %arg9[%c0_47, %c0_48] : memref<20x128xf32, #tpu.memory_space<vmem>>, vector<20x128xf32>
      %c0_i32_49 = arith.constant 0 : i32
      %85 = arith.sitofp %c0_i32_49 : i32 to f32
      %86 = vector.shape_cast %83 : vector<20x1xi1> to vector<20x1xi1>
      %87 = vector.broadcast %86 : vector<20x1xi1> to vector<20x128xi1>
      %88 = vector.broadcast %85 : f32 to vector<20x128xf32>
      %89 = arith.select %87, %84, %88 : vector<20x128xi1>, vector<20x128xf32>
      %c0_50 = arith.constant 0 : index
      %c0_51 = arith.constant 0 : index
      %90 = vector.load %arg9[%c0_50, %c0_51] : memref<20x128xf32, #tpu.memory_space<vmem>>, vector<20x128xf32>
      tpu.vector_store %arg9[%c0_50, %c0_51], %89 {strides = array<i32>} : memref<20x128xf32, #tpu.memory_space<vmem>>, vector<20x128xf32>,
    } else {
    }
    %c0_12 = arith.constant 0 : index
    %c0_13 = arith.constant 0 : index
    %26 = vector.load %arg9[%c0_12, %c0_13] : memref<20x128xf32, #tpu.memory_space<vmem>>, vector<20x128xf32>
    %27 = vector.extract_strided_slice %5 {offsets = [1, 0], sizes = [1, 128], strides = [1, 1]} : vector<4x128xf32> to vector<1x128xf32>
    %28 = vector.extract_strided_slice %26 {offsets = [0, 0], sizes = [18, 128], strides = [1, 1]} : vector<20x128xf32> to vector<18x128xf32>
    %c0_14 = arith.constant 0 : index
    %c0_15 = arith.constant 0 : index
    %29 = vector.load %arg4[%c0_14, %c0_15] : memref<384x128xf32, #tpu.memory_space<vmem>>, vector<128x128xf32>
    %cst_16 = arith.constant dense<0.000000e+00> : vector<18x128xf32>
    %30 = tpu.matmul %28, %29, %cst_16 {dimension_numbers = #tpu.dot_dimension_numbers<[1], [0], [0], [1], [0, 0, 1, 1], [], []>} : vector<18x128xf32>, vector<128x128xf32>, vector<18x128xf32> -> vector<18x128xf32>
    %31 = vector.extract_strided_slice %26 {offsets = [1, 0], sizes = [18, 128], strides = [1, 1]} : vector<20x128xf32> to vector<18x128xf32>
    %c128 = arith.constant 128 : index
    %c0_17 = arith.constant 0 : index
    %32 = vector.load %arg4[%c128, %c0_17] : memref<384x128xf32, #tpu.memory_space<vmem>>, vector<128x128xf32>
    %cst_18 = arith.constant dense<0.000000e+00> : vector<18x128xf32>
    %33 = tpu.matmul %31, %32, %cst_18 {dimension_numbers = #tpu.dot_dimension_numbers<[1], [0], [0], [1], [0, 0, 1, 1], [], []>} : vector<18x128xf32>, vector<128x128xf32>, vector<18x128xf32> -> vector<18x128xf32>
    %34 = arith.addf %30, %33 : vector<18x128xf32>
    %35 = vector.extract_strided_slice %26 {offsets = [2, 0], sizes = [18, 128], strides = [1, 1]} : vector<20x128xf32> to vector<18x128xf32>
    %c256 = arith.constant 256 : index
    %c0_19 = arith.constant 0 : index
    %36 = vector.load %arg4[%c256, %c0_19] : memref<384x128xf32, #tpu.memory_space<vmem>>, vector<128x128xf32>
    %cst_20 = arith.constant dense<0.000000e+00> : vector<18x128xf32>
    %37 = tpu.matmul %35, %36, %cst_20 {dimension_numbers = #tpu.dot_dimension_numbers<[1], [0], [0], [1], [0, 0, 1, 1], [], []>} : vector<18x128xf32>, vector<128x128xf32>, vector<18x128xf32> -> vector<18x128xf32>
    %38 = arith.addf %34, %37 : vector<18x128xf32>
    %39 = vector.broadcast %27 : vector<1x128xf32> to vector<18x128xf32>
    %40 = arith.addf %38, %39 : vector<18x128xf32>
    %cst_21 = arith.constant 0.000000e+00 : f32
    %41 = vector.broadcast %cst_21 : f32 to vector<18x128xf32>
    %42 = arith.maximumf %40, %41 : vector<18x128xf32>
    %c0_22 = arith.constant 0 : index
    %c0_23 = arith.constant 0 : index
    %43 = vector.load %arg10[%c0_22, %c0_23] : memref<18x128xf32, #tpu.memory_space<vmem>>, vector<18x128xf32>
    tpu.vector_store %arg10[%c0_22, %c0_23], %42 {strides = array<i32>} : memref<18x128xf32, #tpu.memory_space<vmem>>, vector<18x128xf32>,
    %44 = arith.extui %23 : i1 to i32
    %c0_i32_24 = arith.constant 0 : i32
    %45 = arith.cmpi ne, %44, %c0_i32_24 : i32
    scf.if %45 {
      %c1_i32 = arith.constant 1 : i32
      %75 = arith.subi %0, %c1_i32 : i32
      %76 = tpu.iota {dimensions = array<i32: 0>} : vector<18x1xi32>
      %77 = vector.broadcast %75 : i32 to vector<18x1xi32>
      %78 = arith.addi %77, %76 : vector<18x1xi32>
      %c0_i32_44 = arith.constant 0 : i32
      %79 = vector.broadcast %c0_i32_44 : i32 to vector<18x1xi32>
      %80 = arith.cmpi sge, %78, %79 : vector<18x1xi32>
      %c16_i32_45 = arith.constant 16 : i32
      %81 = vector.broadcast %c16_i32_45 : i32 to vector<18x1xi32>
      %82 = arith.cmpi slt, %78, %81 : vector<18x1xi32>
      %83 = arith.andi %80, %82 : vector<18x1xi1>
      %c0_46 = arith.constant 0 : index
      %c0_47 = arith.constant 0 : index
      %84 = vector.load %arg10[%c0_46, %c0_47] : memref<18x128xf32, #tpu.memory_space<vmem>>, vector<18x128xf32>
      %c0_i32_48 = arith.constant 0 : i32
      %85 = arith.sitofp %c0_i32_48 : i32 to f32
      %86 = vector.shape_cast %83 : vector<18x1xi1> to vector<18x1xi1>
      %87 = vector.broadcast %86 : vector<18x1xi1> to vector<18x128xi1>
      %88 = vector.broadcast %85 : f32 to vector<18x128xf32>
      %89 = arith.select %87, %84, %88 : vector<18x128xi1>, vector<18x128xf32>
      %c0_49 = arith.constant 0 : index
      %c0_50 = arith.constant 0 : index
      %90 = vector.load %arg10[%c0_49, %c0_50] : memref<18x128xf32, #tpu.memory_space<vmem>>, vector<18x128xf32>
      tpu.vector_store %arg10[%c0_49, %c0_50], %89 {strides = array<i32>} : memref<18x128xf32, #tpu.memory_space<vmem>>, vector<18x128xf32>,
    } else {
    }
    %c0_25 = arith.constant 0 : index
    %c0_26 = arith.constant 0 : index
    %46 = vector.load %arg10[%c0_25, %c0_26] : memref<18x128xf32, #tpu.memory_space<vmem>>, vector<18x128xf32>
    %47 = vector.extract_strided_slice %5 {offsets = [2, 0], sizes = [1, 128], strides = [1, 1]} : vector<4x128xf32> to vector<1x128xf32>
    %48 = vector.extract_strided_slice %46 {offsets = [0, 0], sizes = [16, 128], strides = [1, 1]} : vector<18x128xf32> to vector<16x128xf32>
    %c0_27 = arith.constant 0 : index
    %c0_28 = arith.constant 0 : index
    %49 = vector.load %arg5[%c0_27, %c0_28] : memref<384x128xf32, #tpu.memory_space<vmem>>, vector<128x128xf32>
    %cst_29 = arith.constant dense<0.000000e+00> : vector<16x128xf32>
    %50 = tpu.matmul %48, %49, %cst_29 {dimension_numbers = #tpu.dot_dimension_numbers<[1], [0], [0], [1], [0, 0, 1, 1], [], []>} : vector<16x128xf32>, vector<128x128xf32>, vector<16x128xf32> -> vector<16x128xf32>
    %51 = vector.extract_strided_slice %46 {offsets = [1, 0], sizes = [16, 128], strides = [1, 1]} : vector<18x128xf32> to vector<16x128xf32>
    %c128_30 = arith.constant 128 : index
    %c0_31 = arith.constant 0 : index
    %52 = vector.load %arg5[%c128_30, %c0_31] : memref<384x128xf32, #tpu.memory_space<vmem>>, vector<128x128xf32>
    %cst_32 = arith.constant dense<0.000000e+00> : vector<16x128xf32>
    %53 = tpu.matmul %51, %52, %cst_32 {dimension_numbers = #tpu.dot_dimension_numbers<[1], [0], [0], [1], [0, 0, 1, 1], [], []>} : vector<16x128xf32>, vector<128x128xf32>, vector<16x128xf32> -> vector<16x128xf32>
    %54 = arith.addf %50, %53 : vector<16x128xf32>
    %55 = vector.extract_strided_slice %46 {offsets = [2, 0], sizes = [16, 128], strides = [1, 1]} : vector<18x128xf32> to vector<16x128xf32>
    %c256_33 = arith.constant 256 : index
    %c0_34 = arith.constant 0 : index
    %56 = vector.load %arg5[%c256_33, %c0_34] : memref<384x128xf32, #tpu.memory_space<vmem>>, vector<128x128xf32>
    %cst_35 = arith.constant dense<0.000000e+00> : vector<16x128xf32>
    %57 = tpu.matmul %55, %56, %cst_35 {dimension_numbers = #tpu.dot_dimension_numbers<[1], [0], [0], [1], [0, 0, 1, 1], [], []>} : vector<16x128xf32>, vector<128x128xf32>, vector<16x128xf32> -> vector<16x128xf32>
    %58 = arith.addf %54, %57 : vector<16x128xf32>
    %59 = vector.broadcast %47 : vector<1x128xf32> to vector<16x128xf32>
    %60 = arith.addf %58, %59 : vector<16x128xf32>
    %cst_36 = arith.constant 0.000000e+00 : f32
    %61 = vector.broadcast %cst_36 : f32 to vector<16x128xf32>
    %62 = arith.maximumf %60, %61 : vector<16x128xf32>
    %63 = vector.extract_strided_slice %4 {offsets = [3, 0], sizes = [16, 4], strides = [1, 1]} : vector<24x4xf32> to vector<16x4xf32>
    %64 = vector.extract_strided_slice %5 {offsets = [3, 0], sizes = [1, 128], strides = [1, 1]} : vector<4x128xf32> to vector<1x128xf32>
    %c0_37 = arith.constant 0 : index
    %c0_38 = arith.constant 0 : index
    %65 = vector.load %arg6[%c0_37, %c0_38] : memref<4x128xf32, #tpu.memory_space<vmem>>, vector<4x128xf32>
    %cst_39 = arith.constant dense<0.000000e+00> : vector<16x128xf32>
    %66 = tpu.matmul %63, %65, %cst_39 {dimension_numbers = #tpu.dot_dimension_numbers<[1], [0], [0], [1], [0, 0, 1, 1], [], []>} : vector<16x4xf32>, vector<4x128xf32>, vector<16x128xf32> -> vector<16x128xf32>
    %67 = vector.broadcast %64 : vector<1x128xf32> to vector<16x128xf32>
    %68 = arith.addf %66, %67 : vector<16x128xf32>
    %cst_40 = arith.constant 0.000000e+00 : f32
    %69 = vector.broadcast %cst_40 : f32 to vector<16x128xf32>
    %70 = arith.maximumf %68, %69 : vector<16x128xf32>
    %71 = arith.addf %62, %70 : vector<16x128xf32>
    %c0_41 = arith.constant 0 : index
    %c0_42 = arith.constant 0 : index
    %c0_43 = arith.constant 0 : index
    %72 = vector.load %arg8[%c0_41, %c0_42, %c0_43] : memref<1x16x128xf32, #tpu.memory_space<vmem>>, vector<1x16x128xf32>
    %73 = vector.shape_cast %72 : vector<1x16x128xf32> to vector<16x128xf32>
    %74 = vector.shape_cast %71 : vector<16x128xf32> to vector<1x16x128xf32>
    tpu.vector_store %arg8[%c0_41, %c0_42, %c0_43], %74 {strides = array<i32>} : memref<1x16x128xf32, #tpu.memory_space<vmem>>, vector<1x16x128xf32>,
    return
  }
  func.func @transform_0(%arg0: i32, %arg1: i32) -> (i32, i32, i32) {
    %c0_i32 = arith.constant 0 : i32
    %c0_i32_0 = arith.constant 0 : i32
    %c0_i32_1 = arith.constant 0 : i32
    return %arg0, %c0_i32, %c0_i32_0 : i32, i32, i32
  }
  func.func @transform_1(%arg0: i32, %arg1: i32) -> (i32, i32) {
    %c0_i32 = arith.constant 0 : i32
    %c0_i32_0 = arith.constant 0 : i32
    %c0_i32_1 = arith.constant 0 : i32
    return %c0_i32, %c0_i32_0 : i32, i32
  }
  func.func @transform_2(%arg0: i32, %arg1: i32) -> (i32, i32) {
    %c0_i32 = arith.constant 0 : i32
    %c0_i32_0 = arith.constant 0 : i32
    %c0_i32_1 = arith.constant 0 : i32
    return %c0_i32, %c0_i32_0 : i32, i32
  }
  func.func @transform_3(%arg0: i32, %arg1: i32) -> (i32, i32) {
    %c0_i32 = arith.constant 0 : i32
    %c0_i32_0 = arith.constant 0 : i32
    %c0_i32_1 = arith.constant 0 : i32
    return %c0_i32, %c0_i32_0 : i32, i32
  }
  func.func @transform_4(%arg0: i32, %arg1: i32) -> (i32, i32) {
    %c0_i32 = arith.constant 0 : i32
    %c0_i32_0 = arith.constant 0 : i32
    %c0_i32_1 = arith.constant 0 : i32
    return %c0_i32, %c0_i32_0 : i32, i32
  }
  func.func @transform_5(%arg0: i32, %arg1: i32) -> (i32, i32) {
    %c0_i32 = arith.constant 0 : i32
    %c0_i32_0 = arith.constant 0 : i32
    %c0_i32_1 = arith.constant 0 : i32
    return %c0_i32, %c0_i32_0 : i32, i32
  }
  func.func @transform_6(%arg0: i32, %arg1: i32) -> (i32, i32, i32) {
    %c0_i32 = arith.constant 0 : i32
    %c0_i32_0 = arith.constant 0 : i32
    return %arg0, %arg1, %c0_i32 : i32, i32, i32
  }
}

</mosaic_0001>

<bundles_post_ra>
// kernel: tpu_custom_call.1
= control target key start
LH: loop header
LB: loop body
LE: loop exit
PB: predicated region body
PF: predicated region fallthrough
CT: control target
= control target key end

     0   :  { %11 = vsyncpa [#allocation5], 0  ;;  %s2626_s0 = inlined_call_operand.vmem [shape: f32[2,24,4], index: 0, kind: input, shape index: {}]   ;;  %s2627_s1 = inlined_call_operand.vmem [shape: f32[12,128], index: 1, kind: input, shape index: {}]   ;;  %s2628_s2 = inlined_call_operand.hbm [shape: f32[384,128], index: 2, kind: input, shape index: {}]   ;;  %s2629_s3 = inlined_call_operand.hbm [shape: f32[384,128], index: 3, kind: input, shape index: {}]   ;;  %s2630_s4 = inlined_call_operand.vmem [shape: f32[4,128], index: 4, kind: input, shape index: {}]   ;;  %s2631_s5 = inlined_call_operand.vmem [shape: f32[4,128], index: 5, kind: input, shape index: {}]   ;;  %s2632_s6 = inlined_call_operand.hbm [shape: f32[2,16,128], index: 6, kind: output, shape index: {}]  }
   0x1   :  { %12 = vsyncpa [#allocation8], 0 }
   0x2   :  { %13 = vsyncpa [#allocation6], 0 }
   0x3   :  { %15 = vsyncpa [#allocation6 + $0x1], 0  ;;  %s2286_s21 = smov 0   ;;  %s2288_s22 = smov 0  }
   0x4   :  { %s2290_s23 = smov 0   ;;  %s2292_s24 = smov 0  }
   0x5   :  { %s2294_s25 = smov 0   ;;  %s2296_s26 = smov 0  }
   0x6 LB: > { %2639 = sst [smem:[#allocation13_spill]] %s2233_s25  ;;  %s1442_s27 = sadd.s32 4294967295, %s2237_s26   ;;  %s2237_s26 = sphi %s2296_s26, %s21_s26   ;;  %s2233_s25 = sphi %s2294_s25, %s2651_s25   ;;  %s2229_s24 = sphi %s2292_s24, %s2650_s24   ;;  %s2225_s23 = sphi %s2290_s23, %s2654_s23   ;;  %s2221_s22 = sphi %s2288_s22, %s2653_s22   ;;  %s2217_s21 = sphi %s2286_s21, %s2652_s21  }
   0x7   : > { %s1443_s28 = sadd.s32 4294967294, %s2237_s26   ;;  %s33_s29 = sadd.s32 1, %s2233_s25 }
   0x8   : > { %s193_s30 = sadd.s32 1, %s2225_s23  ;;  %p35_p0 = scmp.ge.s32.totalorder %s33_s29, 2 }
   0x9   : > { %p203_p1 = scmp.ne.s32.totalorder %s2225_s23, %s2221_s22  ;;  %p204_p2 = scmp.eq.s32.totalorder %s1442_s27, 1 }
   0xa   : > { %p209_p3 = scmp.ne.s32.totalorder %s2221_s22, %s2217_s21  ;;  %s2656_s29 = smov (%p35_p0, %s33_s29), 0 }
   0xb   : > { %2640 = sst [smem:[#allocation14_spill]] %s2656_s29  ;;  %p2326_p4 = por %p204_p2, %p203_p1 }
   0xc   : > { %p210_p5 = scmp.eq.s32.totalorder %s1443_s28, 1  ;;  %s188_s8 = ssub.s32 %s2233_s25, %s2656_s29 }
   0xd   : > { %s2641_s7 = scalar_select %p2326_p4, 1, 0 }
   0xe   : > { %p1444_p6 = scmp.ge.s32.totalorder %s2237_s26, 1  ;;  %p191_p7 = scmp.eq.s32.totalorder %s188_s8, 0 }
   0xf   : > { %p2333_p8 = por %p210_p5, %p209_p3  ;;  %p217_p9 = scmp.lt.s32.totalorder %s2237_s26, 3 }
  0x10   : > { %s2339_s10 = scalar_select %p191_p7, %s2225_s23, %s193_s30  }
  0x11   : > { %s2642_s9 = scalar_select %p2333_p8, 1, 0 }
  0x12   : > { %p2341_p10 = pnand %p1444_p6, %p217_p9  ;;  %p2345_p11 = scmp.eq.s32.totalorder %s1442_s27, 0 }
  0x13   : > { %s2239_s13 = smov [#allocation4]   ;;  %s2240_s16 = smov [#allocation7]  }
  0x14   : > { %s2643_s11 = scalar_select %p2341_p10, 1, 0 }
  0x15   : > { %s2644_s12 = scalar_select %p2345_p11, 1, 0 }
  0x16   : > { %p2018_p12 = pneg %p2341_p10  ;;  %s232_s14 = sshll.u32 %s2239_s13, 4  ;;  %s233_s14 = int_to_ptr.vmem [resolvable:$true] %s232_s14 }
  0x17   : > { %s245_s17 = sshll.u32 %s2240_s16, 4  ;;  %s2095_s20 = scalar_lea.hbm %s2628_s2, 6144  ;;  %s2357_s17 = int_to_ptr.vmem [resolvable:$true] %s245_s17 }
  0x18   : > { %p2353_p13 = pnand %p2345_p11, %p2018_p12  ;;  %p2096_p0 = scmp.ne.s32.totalorder %s2628_s2, %s2095_s20 }
  0x19   : > { %p2102_p5 = scmp.lt.u32.totalorder %s2095_s20, %s2628_s2 }
  0x1a   : > { %p2097_p1 = pneg %p2353_p13 }
  0x1c   : > { %p2098_p2 = pnand %p2097_p1, %p2096_p0 }
  0x1e   : > { %p2099_p3 = pneg %p2098_p2 }
  0x20   : > { %p2104_p6 = pnand %p2102_p5, %p2099_p3 }
  0x22   : > { %2107 = shalt.err (!%p2104_p6)
}
  0x23   : > { %s2108_s13 = scalar_lea.vmem %s233_s14, 6144  ;;  %p2116_p8 = scmp.lt.s32.totalorder %s233_s14, %s233_s14 }
  0x24   : > { %p2109_p7 = scmp.ne.s32.totalorder %s233_s14, %s2108_s13  ;;  %p2117_p4 = scmp.lt.s32.totalorder %s2108_s13, %s2108_s13 }
  0x26   : > { %p2111_p9 = pnand %p2109_p7, %p2097_p1  ;;  %p2118_p11 = por %p2117_p4, %p2116_p8 }
  0x28   : > { %p2112_p12 = pneg %p2111_p9 }
  0x2a   : > { %p2119_p10 = pnand %p2118_p11, %p2112_p12 }
  0x2c   : > { %2122 = shalt.err (!%p2119_p10)
}
  0x2d   : > { %s2241_s16 = smov 128   ;;  %s2242_s18 = smov 8  }
  0x2e   : > { %2021 = dma.hbm_to_vmem [thread:$0]  (!%p2353_p13), %s2628_s2, 6144, %s233_s14, [#allocation5], %s2241_s16, %s2241_s16, %s2242_s18  }
  0x2f   : > { %s2123_s30 = scalar_lea.hbm %s2629_s3, 6144 }
  0x30   : > { %p2124_p0 = scmp.ne.s32.totalorder %s2629_s3, %s2123_s30  ;;  %p2130_p10 = scmp.lt.u32.totalorder %s2123_s30, %s2629_s3 }
  0x32   : > { %p2126_p4 = pnand %p2124_p0, %p2097_p1 }
  0x34   : > { %p2127_p8 = pneg %p2126_p4 }
  0x36   : > { %p2132_p11 = pnand %p2130_p10, %p2127_p8 }
  0x38   : > { %2135 = shalt.err (!%p2132_p11)
}
  0x39   : > { %s2136_s14 = scalar_lea.vmem %s2357_s17, 6144  ;;  %p2144_p6 = scmp.lt.s32.totalorder %s2357_s17, %s2357_s17 }
  0x3a   : > { %p2137_p2 = scmp.ne.s32.totalorder %s2357_s17, %s2136_s14  ;;  %p2145_p7 = scmp.lt.s32.totalorder %s2136_s14, %s2136_s14 }
  0x3c   : > { %p2139_p3 = pnand %p2137_p2, %p2097_p1  ;;  %p2146_p9 = por %p2145_p7, %p2144_p6 }
  0x3e   : > { %p2140_p5 = pneg %p2139_p3 }
  0x40   : > { %p2147_p12 = pnand %p2146_p9, %p2140_p5 }
  0x42   : > { %2150 = shalt.err (!%p2147_p12)
}
  0x43   : > { %2024 = dma.hbm_to_vmem [thread:$0]  (!%p2353_p13), %s2629_s3, 6144, %s2357_s17, [#allocation8], %s2241_s16, %s2241_s16, %s2242_s18  }
  0x44   : > { %p2646_p0 = scmp.ne.s32.totalorder %s2643_s11, 0 }
  0x45   : > { %p2647_p4 = scmp.ne.s32.totalorder (!%p2646_p0), %s2644_s12, 0 }
  0x46   : > { %296 = sbr.rel (%p2646_p0) target bundleno = 957 (0x3bd), region = 44 }
  0x4d   : > { %2204 = dma.done.wait (%p2647_p4), [#allocation5], 6144  }
  0x4e   : > { %2206 = vsyncadd (%p2647_p4), [#allocation5], 4294961152 }
  0x4f   : > { %2208 = dma.done.wait (%p2647_p4), [#allocation8], 6144  }
  0x50   : > { %2210 = vsyncadd (%p2647_p4), [#allocation8], 4294961152  ;;  %p351_p1 = scmp.lt.s32.totalorder %s2229_s24, 1  ;;  %v2243_v0 = vmov 0.0|0.0   ;;  %vm2244_vm0 = vmmov 0   ;;  %v2245_v1 = vmov 0.0  }
  0x51   : > { %1831 = vmatprep.subr.bf16.mxu0 %v2243_v0  ;;  %1835 = vmatprep.subr.bf16.mxu1 %v2243_v0  ;;  %vm431_vm1 = vcmask 1043456   ;;  %vm377_vm2 = vcmask 1046528   ;;  %v415_v9 = vld [vmem:[%s2627_s1] sm:$0xff]  ;;  %vm392_vm3 = vcmask 1045504   ;;  %v416_v12 = vld [vmem:[%s2627_s1 + $0x8] sm:$0xf] }
  0x52   : > { %s352_s15 = scalar_select %p351_p1, %s2229_s24, 1  ;;  %1589 = vmatprep.mubr.msk.f32.mxu0 %vm2244_vm0, %v2245_v1  ;;  %1630 = vmatprep.mubr.msk.f32.mxu1 %vm2244_vm0, %v2245_v1  ;;  %vm2246_vm4 = vmmov 1   ;;  %v1832_v15 = vpack.c.bf16 %v416_v12, %v415_v9  ;;  %v580_v18 = vld [vmem:[#allocation4 + $0x80] sm:$0xff]  ;;  %v581_v19 = vld [vmem:[#allocation4 + $0x88] sm:$0xff]  ;;  %vm407_vm6 = vcmask 31744   ;;  %vm411_vm7 = vcmask 64512  }
  0x53   : > { %vm1833_vm5 = vmpackc.low %vm431_vm1, %vm2246_vm4  ;;  %s2247_s28 = smov 4   ;;  %v1836_v20 = vpack.c.bf16 %v581_v19, %v580_v18  ;;  %s2248_s30 = smov 8   ;;  %v564_v23 = vld [vmem:[#allocation4] sm:$0xff]  ;;  %v565_v24 = vld [vmem:[#allocation4 + $0x8] sm:$0xff]  ;;  %vm421_vm8 = vcmask 97280   ;;  %v417_v19 = vlaneseq  ;;  %vm1231_vm13 = vcmask 1044480  }
  0x54   : > { %s2007_s11 = smul.u32 24, %s352_s15  ;;  %1834 = vmatpush3.bf16.msk.msra.mxu0 %vm1833_vm5, %v1832_v15  ;;  %v1860_v25 = vpack.c.bf16 %v565_v24, %v564_v23  ;;  %v566_v29 = vld [vmem:[#allocation4 + $0x10] sm:$0xff]  ;;  %v567_v30 = vld [vmem:[#allocation4 + $0x18] sm:$0xff]  ;;  %v568_v36 = vld [vmem:[#allocation4 + $0x20] sm:$0xff]  ;;  %s339_s29 = sand.u32 1, %s2221_s22  }
  0x55   : > { %1859 = vmatprep.subr.bf16.mxu0 %v2243_v0  ;;  %1837 = vmatpush3.bf16.msra.mxu1 %v1836_v20  ;;  %v1863_v33 = vpack.c.bf16 %v567_v30, %v566_v29  ;;  %v569_v37 = vld [vmem:[#allocation4 + $0x28] sm:$0xff]  ;;  %v582_v42 = vld [vmem:[#allocation4 + $0x90] sm:$0xff]  ;;  %v583_v43 = vld [vmem:[#allocation4 + $0x98] sm:$0xff]  ;;  %v2487_v20 = vshrl.u32 %v417_v19, 7  ;;  %s1451_s15 = sshll.u32 %s339_s29, 4  ;;  %s1465_s17 = sshll.u32 %s2229_s24, 8 }
  0x56   : > { %s358_s16 = scalar_lea.vmem %s2626_s0, %s2007_s11  ;;  %1838 = vmatprep.subr.bf16.mxu1 %v2243_v0  ;;  %v1866_v41 = vpack.c.bf16 %v569_v37, %v568_v36  ;;  %v1839_v44 = vpack.c.bf16 %v583_v43, %v582_v42  ;;  %v570_v45 = vld [vmem:[#allocation4 + $0x30] sm:$0xff]  ;;  %v571_v46 = vld [vmem:[#allocation4 + $0x38] sm:$0xff]  ;;  %v584_v48 = vld [vmem:[#allocation4 + $0xa0] sm:$0xff]  ;;  %s341_s11 = scalar_lea.vmem [#allocation9], %s1451_s15 }
  0x57   : > { %v2427_v2 = vld [vmem:[%s358_s16] sm:$0xff]  ;;  %v2429_v3 = vld [vmem:[%s358_s16 + $0x8] sm:$0xff]  ;;  %v2431_v4 = vld [vmem:[%s358_s16 + $0x10] sm:$0xff]  ;;  %v1869_v47 = vpack.c.bf16 %v571_v46, %v570_v45  ;;  %v534_v24 = vadd.s32 4294967294, %v2487_v20  ;;  %s1341_s12 = sshll.u32 %s341_s11, 4  ;;  %s2577_s19 = scalar_lea.hbm %s2632_s6, %s1465_s17  ;;  %s2572_s12 = int_to_ptr.vmem [resolvable:$true] %s1341_s12 }
  0x58   : > { %v378_v5 = vrot.slane %v2427_v2, 1  ;;  %v379_v6 = vrot.slane %v2429_v3, 1  ;;  %v381_v7 = vrot.slane %v2431_v4, 1  ;;  %v393_v8 = vrot.slane %v2427_v2, 2  ;;  %v585_v49 = vld [vmem:[#allocation4 + $0xa8] sm:$0xff]  ;;  %v572_v51 = vld [vmem:[#allocation4 + $0x40] sm:$0xff] }
  0x59   : > { %v394_v10 = vrot.slane %v2429_v3, 2  ;;  %v396_v11 = vrot.slane %v2431_v4, 2  ;;  %1840 = vmatpush3.bf16.msra.mxu1 %v1839_v44  ;;  %v1842_v50 = vpack.c.bf16 %v585_v49, %v584_v48  ;;  %v573_v52 = vld [vmem:[#allocation4 + $0x48] sm:$0xff]  ;;  %v586_v54 = vld [vmem:[#allocation4 + $0xb0] sm:$0xff]  ;;  %v587_v55 = vld [vmem:[#allocation4 + $0xb8] sm:$0xff]  ;;  %vm537_vm9 = vcmp.ge.s32.totalorder %v534_v24, 0 }
  0x5a   : > { %v380_v13 = vsel %vm377_vm2, %v378_v5, %v379_v6  ;;  %v382_v14 = vsel %vm377_vm2, %v379_v6, %v381_v7  ;;  %1841 = vmatprep.subr.bf16.mxu1 %v2243_v0  ;;  %v1872_v53 = vpack.c.bf16 %v573_v52, %v572_v51  ;;  %v1845_v56 = vpack.c.bf16 %v587_v55, %v586_v54  ;;  %v574_v57 = vld [vmem:[#allocation4 + $0x50] sm:$0xff]  ;;  %v575_v58 = vld [vmem:[#allocation4 + $0x58] sm:$0xff]  ;;  %v588_v60 = vld [vmem:[#allocation4 + $0xc0] sm:$0xff]  ;;  %s2579_s20 = scalar_lea.sflag [#allocation6], %s339_s29  ;;  %s2151_s27 = scalar_lea.vmem %s2572_s12, 256 }
  0x5b   : > { %383 = vrot.lane.b32.xlu0 %v380_v13, %s2247_s28  ;;  %385 = vrot.lane.b32.xlu1 %v382_v14, %s2247_s28  ;;  %v395_v16 = vsel %vm392_vm3, %v393_v8, %v394_v10  ;;  %v397_v17 = vsel %vm392_vm3, %v394_v10, %v396_v11  ;;  %v1875_v59 = vpack.c.bf16 %v575_v58, %v574_v57  ;;  %v589_v61 = vld [vmem:[#allocation4 + $0xc8] sm:$0xff]  ;;  %v576_v63 = vld [vmem:[#allocation4 + $0x60] sm:$0xff]  ;;  %v591_v8 = vld [vmem:[#allocation4 + $0xd8] sm:$0xff]  ;;  %v2504_v44 = vadd.s32 16, %v2487_v20  ;;  %p2152_p13 = scmp.ne.s32.totalorder %s2572_s12, %s2151_s27  ;;  %p2648_p8 = scmp.ne.s32.totalorder %s2641_s7, 0 }
  0x5c   : > { %v1848_v62 = vpack.c.bf16 %v589_v61, %v588_v60  ;;  %v577_v5 = vld [vmem:[#allocation4 + $0x68] sm:$0xff]  ;;  %v578_v10 = vld [vmem:[#allocation4 + $0x70] sm:$0xff]  ;;  %v592_v13 = vld [vmem:[#allocation4 + $0xe0] sm:$0xff]  ;;  %s2249_s24 = smov [#allocation9]  }
  0x5d   : > { %1843 = vmatpush3.bf16.msra.mxu1 %v1842_v50  ;;  %v1878_v6 = vpack.c.bf16 %v577_v5, %v576_v63  ;;  %v593_v14 = vld [vmem:[#allocation4 + $0xe8] sm:$0xff]  ;;  %v769_v45 = vld [vmem:[#allocation4 + $0x110] sm:$0xff]  ;;  %v770_v46 = vld [vmem:[#allocation4 + $0x118] sm:$0xff]  ;;  %v536_v51 = vadd.s32 4294967294, %v2504_v44  ;;  %p2153_p10 = pnand %p2152_p13, %p2648_p8 }
  0x5e   : > { %1844 = vmatprep.subr.bf16.mxu1 %v2243_v0  ;;  %v1854_v15 = vpack.c.bf16 %v593_v14, %v592_v13  ;;  %v1887_v50 = vpack.c.bf16 %v770_v46, %v769_v45  ;;  %v771_v52 = vld [vmem:[#allocation4 + $0x120] sm:$0xff]  ;;  %v773_v55 = vld [vmem:[#allocation4 + $0x130] sm:$0xff]  ;;  %v776_v61 = vld [vmem:[#allocation4 + $0x148] sm:$0xff] }
  0x5f   : > { %398 = vrot.lane.b32.xlu0 %v395_v16, %s2248_s30  ;;  %400 = vrot.lane.b32.xlu1 %v397_v17, %s2248_s30  ;;  %v594_v16 = vld [vmem:[#allocation4 + $0xf0] sm:$0xff]  ;;  %v595_v17 = vld [vmem:[#allocation4 + $0xf8] sm:$0xff]  ;;  %vm542_vm10 = vcmp.lt.s32.totalorder %v536_v51, 16  ;;  %v775_v60 = vld [vmem:[#allocation4 + $0x140] sm:$0xff]  ;;  %p2154_p11 = pneg %p2153_p10 }
  0x60   : > { %v1857_v18 = vpack.c.bf16 %v595_v17, %v594_v16  ;;  %v777_v63 = vld [vmem:[#allocation4 + $0x150] sm:$0xff]  ;;  %v778_v5 = vld [vmem:[#allocation4 + $0x158] sm:$0xff]  ;;  %v927_v19 = vld [vmem:[#allocation7 + $0x8] sm:$0xff] }
  0x61   : > { %1846 = vmatpush3.bf16.msra.mxu1 %v1845_v56  ;;  %v774_v56 = vld [vmem:[#allocation4 + $0x138] sm:$0xff]  ;;  %v781_v13 = vld [vmem:[#allocation4 + $0x170] sm:$0xff]  ;;  %v946_v51 = vld [vmem:[#allocation7 + $0xa0] sm:$0xff] }
  0x62   : > { %1847 = vmatprep.subr.bf16.mxu1 %v2243_v0  ;;  %v782_v14 = vld [vmem:[#allocation4 + $0x178] sm:$0xff]  ;;  %v944_v45 = vld [vmem:[#allocation7 + $0x90] sm:$0xff] }
  0x63   : > { %387 = vrot.lane.b32.xlu0 %v381_v7, %s2247_s28  ;;  %402 = vrot.lane.b32.xlu1 %v396_v11, %s2248_s30  ;;  %v590_v7 = vld [vmem:[#allocation4 + $0xd0] sm:$0xff]  ;;  %v579_v11 = vld [vmem:[#allocation4 + $0x78] sm:$0xff]  ;;  %s2155_s28 = sshll.u32 %s2249_s24, 4  ;;  %s2156_s28 = int_to_ptr.vmem [resolvable:$false] %s2155_s28 }
  0x64   : > { %v1851_v9 = vpack.c.bf16 %v591_v8, %v590_v7  ;;  %v1881_v12 = vpack.c.bf16 %v579_v11, %v578_v10  ;;  %v1899_v8 = vpack.c.bf16 %v778_v5, %v777_v63  ;;  %v780_v10 = vld [vmem:[#allocation4 + $0x168] sm:$0xff]  ;;  %v945_v46 = vld [vmem:[#allocation7 + $0x98] sm:$0xff]  ;;  %v954_v5 = vld [vmem:[#allocation7 + $0xe0] sm:$0xff]  ;;  %s2157_s8 = scalar_lea.vmem %s2156_s28, 512  ;;  %p2158_p2 = scmp.lt.s32.totalorder %s2572_s12, %s2156_s28 }
  0x65   : > { %1849 = vmatpush3.bf16.msra.mxu1 %v1848_v62  ;;  %v1896_v62 = vpack.c.bf16 %v776_v61, %v775_v60  ;;  %v952_v61 = vld [vmem:[#allocation7 + $0xd0] sm:$0xff]  ;;  %p2159_p3 = scmp.lt.s32.totalorder %s2157_s8, %s2151_s27 }
  0x66   : > { %1850 = vmatprep.subr.bf16.mxu1 %v2243_v0 }
  0x67   : > { %p2160_p5 = por %p2159_p3, %p2158_p2 }
  0x69   : > { %1852 = vmatpush3.bf16.msra.mxu1 %v1851_v9  ;;  %v779_v9 = vld [vmem:[#allocation4 + $0x160] sm:$0xff]  ;;  %p2161_p6 = pnand %p2160_p5, %p2154_p11 }
  0x6a   : > { %1853 = vmatprep.subr.bf16.mxu1 %v2243_v0 }
  0x6d   : > { %1855 = vmatpush3.bf16.msra.mxu1 %v1854_v15  ;;  %v1905_v15 = vpack.c.bf16 %v782_v14, %v781_v13 }
  0x6e   : > { %1856 = vmatprep.subr.bf16.mxu1 %v2243_v0 }
  0x71   : > { %1858 = vmatpush3.bf16.msra.mxu1 %v1857_v18  ;;  %v926_v18 = vld [vmem:[#allocation7] sm:$0xff] }
  0x72   : > { %1883 = vmatprep.subr.bf16.mxu1 %v2243_v0 }
  0xcd   : > { %v384_v21 = vpop.permute.xlu0 %383  ;;  %v386_v22 = vpop.permute.xlu1 %385 }
  0xce   : > { %v408_v26 = vsel %vm407_vm6, %v2427_v2, %v384_v21  ;;  %v409_v32 = vsel %vm407_vm6, %v2429_v3, %v386_v22  ;;  %v419_v21 = vsub.s32 0, %v2487_v20  ;;  %v2493_v22 = vld [vmem:[%s2631_s5] sm:$0xf] }
  0xd0   : > { %v420_v23 = vrot.slane %v2493_v22, %v419_v21  ;;  %v1939_v21 = vpack.c.bf16 %v927_v19, %v926_v18 }
  0xd1   : > { %v399_v27 = vpop.permute.xlu0 %398  ;;  %v401_v28 = vpop.permute.xlu1 %400 }
  0xd2   : > { %v412_v31 = vsel %vm411_vm7, %v408_v26, %v399_v27  ;;  %v413_v38 = vsel %vm411_vm7, %v409_v32, %v401_v28 }
  0xd3   : > { %1590 = vmatmul.mubr.msk.f32.vlgmr.msra.gmra.mrb[0].mxu0 %vm421_vm8, %v412_v31 }
  0xd4   : > { %1592 = vmatprep.mubr.msk.f32.mxu0 %vm2244_vm0, %v2245_v1  ;;  %1861 = vmatpush3.bf16.msra.mxu0 %v1860_v25 }
  0xd5   : > { %v388_v34 = vpop.permute.xlu0 %387  ;;  %v403_v35 = vpop.permute.xlu1 %402  ;;  %1862 = vmatprep.subr.bf16.mxu0 %v2243_v0 }
  0xd6   : > { %v410_v39 = vsel %vm407_vm6, %v2431_v4, %v388_v34  ;;  %v768_v34 = vld [vmem:[#allocation4 + $0x108] sm:$0xff] }
  0xd7   : > { %1593 = vmatmul.mubr.msk.f32.gmra.mrb[2].mxu0 %vm421_vm8, %v413_v38  ;;  %v414_v40 = vsel %vm411_vm7, %v410_v39, %v403_v35 }
  0xd8   : > { %1595 = vmatprep.mubr.msk.f32.mxu0 %vm2244_vm0, %v2245_v1  ;;  %1864 = vmatpush3.bf16.msra.mxu0 %v1863_v33  ;;  %v767_v33 = vld [vmem:[#allocation4 + $0x100] sm:$0xff] }
  0xd9   : > { %1865 = vmatprep.subr.bf16.mxu0 %v2243_v0  ;;  %v1884_v38 = vpack.c.bf16 %v768_v34, %v767_v33  ;;  %v936_v33 = vld [vmem:[#allocation7 + $0x50] sm:$0xff]  ;;  %v937_v34 = vld [vmem:[#allocation7 + $0x58] sm:$0xff] }
  0xdb   : > { %1596 = vmatmul.mubr.msk.f32.gmra.mrb[4].mxu0 %vm421_vm8, %v414_v40 }
  0xdc   : > { %1867 = vmatpush3.bf16.msra.mxu0 %v1866_v41  ;;  %1671 = vmatprep.mubr.msk.f32.mxu0 %vm2244_vm0, %v2245_v1 }
  0xdd   : > { %1868 = vmatprep.subr.bf16.mxu0 %v2243_v0 }
  0xe0   : > { %1870 = vmatpush3.bf16.msra.mxu0 %v1869_v47 }
  0xe1   : > { %1871 = vmatprep.subr.bf16.mxu0 %v2243_v0 }
  0xe4   : > { %1873 = vmatpush3.bf16.msra.mxu0 %v1872_v53  ;;  %v772_v53 = vld [vmem:[#allocation4 + $0x128] sm:$0xff] }
  0xe5   : > { %1874 = vmatprep.subr.bf16.mxu0 %v2243_v0  ;;  %v1890_v54 = vpack.c.bf16 %v772_v53, %v771_v52  ;;  %v947_v52 = vld [vmem:[#allocation7 + $0xa8] sm:$0xff] }
  0xe8   : > { %1876 = vmatpush3.bf16.msra.mxu0 %v1875_v59  ;;  %v1893_v59 = vpack.c.bf16 %v774_v56, %v773_v55  ;;  %v948_v55 = vld [vmem:[#allocation7 + $0xb0] sm:$0xff]  ;;  %v949_v56 = vld [vmem:[#allocation7 + $0xb8] sm:$0xff] }
  0xe9   : > { %1877 = vmatprep.subr.bf16.mxu0 %v2243_v0 }
  0xec   : > { %1879 = vmatpush3.bf16.msra.mxu0 %v1878_v6 }
  0xed   : > { %1880 = vmatprep.subr.bf16.mxu0 %v2243_v0 }
  0xf0   : > { %1882 = vmatpush3.bf16.msra.mxu0 %v1881_v12  ;;  %v1902_v12 = vpack.c.bf16 %v780_v10, %v779_v9  ;;  %v957_v9 = vld [vmem:[#allocation7 + $0xf8] sm:$0xff] }
  0xf1   : > { %1940 = vmatprep.subr.bf16.mxu0 %v1939_v21 }
 0x1a6   : > { %v501_v25 = vpop.f32.mrb[0].mxu0 }
 0x1a7   : > { %v502_v26 = vadd.f32 %v501_v25, %v420_v23  ;;  %v1591_v27 = vpop.f32.mrb[1].mxu0  ;;  %v930_v25 = vld [vmem:[#allocation7 + $0x20] sm:$0xff] }
 0x1a9   : > { %v515_v28 = vmax.f32 %v502_v26, 0.0  ;;  %v931_v26 = vld [vmem:[#allocation7 + $0x28] sm:$0xff] }
 0x1aa   : > { %v506_v29 = vpop.f32.mrb[2].mxu0  ;;  %v1947_v27 = vpack.c.bf16 %v931_v26, %v930_v25 }
 0x1ab   : > { %v555_v30 = vsel %vm537_vm9, %v515_v28, 0.0  ;;  %v507_v31 = vadd.f32 %v506_v29, %v420_v23  ;;  %v1594_v32 = vpop.f32.mrb[3].mxu0  ;;  %2093 = vmatmul.mubr.msk.f32.vlgmr.msra.gmra.mrb[6].mxu0 %vm537_vm9, %v515_v28  ;;  %v932_v28 = vld [vmem:[#allocation7 + $0x30] sm:$0xff]  ;;  %v933_v29 = vld [vmem:[#allocation7 + $0x38] sm:$0xff] }
 0x1ac   : > { %1674 = vmatprep.mubr.msk.f32.mxu0 %vm2244_vm0, %v2245_v1  ;;  %v783_v37 = vrot.slane %v555_v30, 2  ;;  %v599_v43 = vrot.slane %v555_v30, 1  ;;  %1942 = vmatpush3.bf16.msra.mxu0 %v1939_v21  ;;  %v1951_v30 = vpack.c.bf16 %v933_v29, %v932_v28  ;;  %v876_v28 = vsub.s32 1, %v2487_v20 }
 0x1ad   : > { %v2497_v35 = vmax.f32 %v507_v31, 0.0  ;;  %v935_v31 = vld [vmem:[#allocation7 + $0x48] sm:$0xff] }
 0x1ae   : > { %v511_v36 = vpop.f32.mrb[4].mxu0  ;;  %v877_v29 = vrot.slane %v2493_v22, %v876_v28 }
 0x1af   : > { %v512_v39 = vadd.f32 %v511_v36, %v420_v23  ;;  %v1597_v40 = vpop.f32.mrb[5].mxu0  ;;  %v600_v41 = vrot.slane %v2497_v35, 1  ;;  %v784_v42 = vrot.slane %v2497_v35, 2  ;;  %1675 = vmatmul.mubr.f32.gmra.mrb[8].mxu0 %v2497_v35  ;;  %v929_v23 = vld [vmem:[#allocation7 + $0x18] sm:$0xff]  ;;  %v1959_v35 = vpack.c.bf16 %v937_v34, %v936_v33  ;;  %v938_v36 = vld [vmem:[#allocation7 + $0x60] sm:$0xff] }
 0x1b0   : > { %1677 = vmatprep.mubr.msk.f32.mxu0 %vm2244_vm0, %v2245_v1 }
 0x1b1   : > { %v517_v47 = vmax.f32 %v512_v39, 0.0  ;;  %v601_v48 = vsel %vm377_vm2, %v599_v43, %v600_v41  ;;  %v785_v49 = vsel %vm392_vm3, %v783_v37, %v784_v42  ;;  %v939_v37 = vld [vmem:[#allocation7 + $0x68] sm:$0xff]  ;;  %v941_v43 = vld [vmem:[#allocation7 + $0x78] sm:$0xff] }
 0x1b2   : > { %1631 = vmatmul.mubr.f32.vlgmr.msra.gmra.mrb[0].mxu1 %v601_v48  ;;  %v943_v39 = vld [vmem:[#allocation7 + $0x88] sm:$0xff]  ;;  %v1963_v40 = vpack.c.bf16 %v939_v37, %v938_v36  ;;  %v1911_v48 = vpack.c.bf16 %v945_v46, %v944_v45 }
 0x1b3   : > { %520 = vst [vmem:[#allocation2 + $0x10] sm:$0xf] %v517_v47  ;;  %1885 = vmatpush3.bf16.msra.mxu1 %v1884_v38  ;;  %1633 = vmatprep.mubr.msk.f32.mxu1 %vm2244_vm0, %v2245_v1  ;;  %v942_v38 = vld [vmem:[#allocation7 + $0x80] sm:$0xff] }
 0x1b4   : > { %1886 = vmatprep.subr.bf16.mxu1 %v2243_v0 }
 0x1b7   : > { %1888 = vmatpush3.bf16.msra.mxu1 %v1887_v50  ;;  %v1119_v50 = vld [vmem:[#allocation7 + $0x108] sm:$0xff] }
 0x1b8   : > { %1889 = vmatprep.subr.bf16.mxu1 %v2243_v0 }
 0x1ba   : > { %v548_v57 = vld [vmem:[#allocation2 + $0x10] sm:$0xf] }
 0x1bb   : > { %v557_v58 = vsel %vm542_vm10, %v548_v57, 0.0  ;;  %1891 = vmatpush3.bf16.msra.mxu1 %v1890_v54  ;;  %v1915_v54 = vpack.c.bf16 %v947_v52, %v946_v51  ;;  %v1919_v57 = vpack.c.bf16 %v949_v56, %v948_v55 }
 0x1bc   : > { %560 = vst [vmem:[#allocation2 + $0x10] sm:$0xf] %v557_v58  ;;  %1892 = vmatprep.subr.bf16.mxu1 %v2243_v0  ;;  %v950_v58 = vld [vmem:[#allocation7 + $0xc0] sm:$0xff] }
 0x1bf   : > { %1894 = vmatpush3.bf16.msra.mxu1 %v1893_v59  ;;  %v951_v59 = vld [vmem:[#allocation7 + $0xc8] sm:$0xff] }
 0x1c0   : > { %1895 = vmatprep.subr.bf16.mxu1 %v2243_v0  ;;  %v1923_v60 = vpack.c.bf16 %v951_v59, %v950_v58 }
 0x1c3   : > { %v563_v6 = vld [vmem:[#allocation2 + $0x10] sm:$0xf]  ;;  %1897 = vmatpush3.bf16.msra.mxu1 %v1896_v62  ;;  %v953_v62 = vld [vmem:[#allocation7 + $0xd8] sm:$0xff] }
 0x1c4   : > { %v602_v7 = vrot.slane %v563_v6, 1  ;;  %1678 = vmatmul.mubr.f32.gmra.mrb[10].mxu0 %v563_v6  ;;  %1898 = vmatprep.subr.bf16.mxu1 %v2243_v0  ;;  %v786_v16 = vrot.slane %v563_v6, 2  ;;  %v1927_v63 = vpack.c.bf16 %v953_v62, %v952_v61  ;;  %v955_v6 = vld [vmem:[#allocation7 + $0xe8] sm:$0xff]  ;;  %v1125_v61 = vld [vmem:[#allocation7 + $0x138] sm:$0xff]  ;;  %v898_v62 = vadd.s32 4294967295, %v2504_v44 }
 0x1c6   : > { %v603_v11 = vsel %vm377_vm2, %v600_v41, %v602_v7  ;;  %v787_v17 = vsel %vm392_vm3, %v784_v42, %v786_v16  ;;  %v1907_v41 = vpack.c.bf16 %v943_v39, %v942_v38  ;;  %v940_v42 = vld [vmem:[#allocation7 + $0x70] sm:$0xff]  ;;  %v1121_v39 = vld [vmem:[#allocation7 + $0x118] sm:$0xff]  ;;  %vm904_vm12 = vcmp.lt.s32.totalorder %v898_v62, 16 }
 0x1c7   : > { %1634 = vmatmul.mubr.f32.gmra.mrb[2].mxu1 %v603_v11  ;;  %v1967_v47 = vpack.c.bf16 %v941_v43, %v940_v42  ;;  %v2541_v11 = vld [vmem:[%s2630_s4] sm:$0xf] }
 0x1c8   : > { %1636 = vmatprep.mubr.msk.f32.mxu1 %vm2244_vm0, %v2245_v1  ;;  %1900 = vmatpush3.bf16.msra.mxu1 %v1899_v8  ;;  %v1931_v8 = vpack.c.bf16 %v955_v6, %v954_v5  ;;  %v1120_v38 = vld [vmem:[#allocation7 + $0x110] sm:$0xff]  ;;  %v1126_v5 = vld [vmem:[#allocation7 + $0x140] sm:$0xff]  ;;  %v1127_v6 = vld [vmem:[#allocation7 + $0x148] sm:$0xff] }
 0x1c9   : > { %1901 = vmatprep.subr.bf16.mxu1 %v2243_v0 }
 0x1cb   : > { %1637 = vmatmul.mubr.f32.gmra.mrb[4].mxu1 %v602_v7  ;;  %v956_v7 = vld [vmem:[#allocation7 + $0xf0] sm:$0xff] }
 0x1cc   : > { %1903 = vmatpush3.bf16.msra.mxu1 %v1902_v12  ;;  %1712 = vmatprep.mubr.msk.f32.mxu1 %vm2244_vm0, %v2245_v1  ;;  %v1935_v10 = vpack.c.bf16 %v957_v9, %v956_v7  ;;  %v1129_v9 = vld [vmem:[#allocation7 + $0x158] sm:$0xff] }
 0x1cd   : > { %1904 = vmatprep.subr.bf16.mxu1 %v2243_v0  ;;  %v928_v0 = vld [vmem:[#allocation7 + $0x10] sm:$0xff] }
 0x1ce   : > { %v1943_v24 = vpack.c.bf16 %v929_v23, %v928_v0 }
 0x1d0   : > { %1906 = vmatpush3.bf16.msra.mxu1 %v1905_v15  ;;  %1944 = vmatprep.subr.bf16.mxu0 %v1943_v24 }
 0x1d1   : > { %1946 = vmatpush3.bf16.msra.mxu0 %v1943_v24  ;;  %1908 = vmatprep.subr.bf16.mxu1 %v1907_v41 }
 0x1d2   : > { %1948 = vmatprep.subr.bf16.mxu0 %v1947_v27 }
 0x1d3   : > { %1713 = vmatmul.mubr.f32.vlgmr.msra.gmra.mrb[6].mxu1 %v785_v49  ;;  %v1118_v49 = vld [vmem:[#allocation7 + $0x100] sm:$0xff] }
 0x1d4   : > { %1715 = vmatprep.mubr.msk.f32.mxu1 %vm2244_vm0, %v2245_v1  ;;  %1910 = vmatpush3.bf16.msra.mxu1 %v1907_v41  ;;  %v2535_v53 = vpack.c.bf16 %v1119_v50, %v1118_v49  ;;  %v1122_v49 = vld [vmem:[#allocation7 + $0x120] sm:$0xff]  ;;  %v1123_v50 = vld [vmem:[#allocation7 + $0x128] sm:$0xff] }
 0x1d5   : > { %1950 = vmatpush3.bf16.msra.mxu0 %v1947_v27  ;;  %1912 = vmatprep.subr.bf16.mxu1 %v1911_v48  ;;  %v1979_v59 = vpack.c.bf16 %v1123_v50, %v1122_v49 }
 0x1d6   : > { %1952 = vmatprep.subr.bf16.mxu0 %v1951_v30 }
 0x1d7   : > { %1716 = vmatmul.mubr.f32.gmra.mrb[8].mxu1 %v787_v17 }
 0x1d8   : > { %1718 = vmatprep.mubr.msk.f32.mxu1 %vm2244_vm0, %v2245_v1  ;;  %v934_v1 = vld [vmem:[#allocation7 + $0x40] sm:$0xff]  ;;  %1914 = vmatpush3.bf16.msra.mxu1 %v1911_v48 }
 0x1d9   : > { %1954 = vmatpush3.bf16.msra.mxu0 %v1951_v30  ;;  %v1955_v32 = vpack.c.bf16 %v935_v31, %v934_v1  ;;  %1916 = vmatprep.subr.bf16.mxu1 %v1915_v54  ;;  %v896_v1 = vadd.s32 4294967295, %v2487_v20 }
 0x1db   : > { %1719 = vmatmul.mubr.f32.gmra.mrb[10].mxu1 %v786_v16  ;;  %1956 = vmatprep.subr.bf16.mxu0 %v1955_v32  ;;  %vm899_vm11 = vcmp.ge.s32.totalorder %v896_v1, 0 }
 0x1dc   : > { %1918 = vmatpush3.bf16.msra.mxu1 %v1915_v54 }
 0x1dd   : > { %1958 = vmatpush3.bf16.msra.mxu0 %v1955_v32  ;;  %1920 = vmatprep.subr.bf16.mxu1 %v1919_v57 }
 0x1de   : > { %1960 = vmatprep.subr.bf16.mxu0 %v1959_v35 }
 0x1e0   : > { %1922 = vmatpush3.bf16.msra.mxu1 %v1919_v57 }
 0x1e1   : > { %1962 = vmatpush3.bf16.msra.mxu0 %v1959_v35  ;;  %1924 = vmatprep.subr.bf16.mxu1 %v1923_v60 }
 0x1e2   : > { %1964 = vmatprep.subr.bf16.mxu0 %v1963_v40 }
 0x1e4   : > { %1926 = vmatpush3.bf16.msra.mxu1 %v1923_v60  ;;  %v1124_v60 = vld [vmem:[#allocation7 + $0x130] sm:$0xff] }
 0x1e5   : > { %1966 = vmatpush3.bf16.msra.mxu0 %v1963_v40  ;;  %1928 = vmatprep.subr.bf16.mxu1 %v1927_v63 }
 0x1e6   : > { %1968 = vmatprep.subr.bf16.mxu0 %v1967_v47 }
 0x1e8   : > { %1930 = vmatpush3.bf16.msra.mxu1 %v1927_v63  ;;  %v1983_v63 = vpack.c.bf16 %v1125_v61, %v1124_v60 }
 0x1e9   : > { %1970 = vmatpush3.bf16.msra.mxu0 %v1967_v47  ;;  %1932 = vmatprep.subr.bf16.mxu1 %v1931_v8  ;;  %v1975_v47 = vpack.c.bf16 %v1121_v39, %v1120_v38 }
 0x1ea   : > { %1972 = vmatprep.subr.bf16.mxu0 %v2535_v53 }
 0x1ec   : > { %1934 = vmatpush3.bf16.msra.mxu1 %v1931_v8  ;;  %v1128_v8 = vld [vmem:[#allocation7 + $0x150] sm:$0xff] }
 0x1ed   : > { %1936 = vmatprep.subr.bf16.mxu1 %v1935_v10 }
 0x1f0   : > { %1938 = vmatpush3.bf16.msra.mxu1 %v1935_v10 }
 0x1f1   : > { %1826 = vmatprep.subr.msk.mxu1 %vm431_vm1, %v2541_v11 }
 0x27e   : > { %v753_v12 = vpop.f32.mrb[6].mxu0 }
 0x27f   : > { %v1673_v13 = vpop.f32.mrb[7].mxu0 }
 0x280   : > { %v1130_v13 = vld [vmem:[#allocation7 + $0x160] sm:$0xff] }
 0x282   : > { %v758_v14 = vpop.f32.mrb[8].mxu0 }
 0x283   : > { %v1676_v15 = vpop.f32.mrb[9].mxu0 }
 0x284   : > { %v1132_v15 = vld [vmem:[#allocation7 + $0x170] sm:$0xff] }
 0x285   : > { %v673_v16 = vpop.f32.mrb[0].mxu1 }
 0x286   : > { %v754_v17 = vadd.f32 %v753_v12, %v673_v16  ;;  %v1632_v18 = vpop.f32.mrb[1].mxu1  ;;  %v1991_v12 = vpack.c.bf16 %v1129_v9, %v1128_v8  ;;  %v1133_v16 = vld [vmem:[#allocation7 + $0x178] sm:$0xff] }
 0x287   : > { %v1233_v18 = vrot.slane %v2429_v3, 3 }
 0x297   : > { %v763_v19 = vpop.f32.mrb[10].mxu0 }
 0x298   : > { %v1679_v21 = vpop.f32.mrb[11].mxu0 }
 0x29a   : > { %v678_v0 = vpop.f32.mrb[2].mxu1 }
 0x29b   : > { %v759_v23 = vadd.f32 %v758_v14, %v678_v0  ;;  %v1635_v24 = vpop.f32.mrb[3].mxu1  ;;  %v1131_v14 = vld [vmem:[#allocation7 + $0x168] sm:$0xff]  ;;  %v1235_v0 = vrot.slane %v2431_v4, 3 }
 0x29c   : > { %v1995_v44 = vpack.c.bf16 %v1131_v14, %v1130_v13 }
 0x29e   : > { %v683_v25 = vpop.f32.mrb[4].mxu1 }
 0x29f   : > { %v764_v26 = vadd.f32 %v763_v19, %v683_v25  ;;  %v1638_v27 = vpop.f32.mrb[5].mxu1 }
 0x2a6   : > { %v857_v30 = vpop.f32.mrb[6].mxu1 }
 0x2a7   : > { %v871_v31 = vadd.f32 %v857_v30, %v754_v17  ;;  %v1714_v32 = vpop.f32.mrb[7].mxu1  ;;  %v1232_v17 = vrot.slane %v2427_v2, 3  ;;  %v1236_v2 = vsel %vm1231_vm13, %v1233_v18, %v1235_v0 }
 0x2a9   : > { %v878_v33 = vadd.f32 %v877_v29, %v871_v31  ;;  %v1234_v25 = vsel %vm1231_vm13, %v1232_v17, %v1233_v18 }
 0x2aa   : > { %v862_v34 = vpop.f32.mrb[8].mxu1 }
 0x2ab   : > { %v881_v35 = vmax.f32 %v878_v33, 0.0  ;;  %v872_v36 = vadd.f32 %v862_v34, %v759_v23  ;;  %v1717_v37 = vpop.f32.mrb[9].mxu1  ;;  %v1999_v23 = vpack.c.bf16 %v1133_v16, %v1132_v15 }
 0x2ad   : > { %v917_v40 = vsel %vm899_vm11, %v881_v35, 0.0  ;;  %v879_v41 = vadd.f32 %v877_v29, %v872_v36  ;;  %2094 = vmatprep.mubr.msk.f32.mxu0 %vm899_vm11, %v881_v35 }
 0x2ae   : > { %v867_v42 = vpop.f32.mrb[10].mxu1  ;;  %v961_v48 = vrot.slane %v917_v40, 1  ;;  %v1134_v52 = vrot.slane %v917_v40, 2 }
 0x2af   : > { %v2548_v43 = vmax.f32 %v879_v41, 0.0  ;;  %v873_v45 = vadd.f32 %v867_v42, %v764_v26  ;;  %v1720_v46 = vpop.f32.mrb[11].mxu1  ;;  %v1229_v26 = vsub.s32 3, %v2487_v20 }
 0x2b1   : > { %v880_v51 = vadd.f32 %v877_v29, %v873_v45  ;;  %1789 = vmatmul.mubr.f32.vlgmr.msra.gmra.mrb[12].mxu0 %v2548_v43  ;;  %v962_v54 = vrot.slane %v2548_v43, 1  ;;  %v1135_v55 = vrot.slane %v2548_v43, 2  ;;  %v1220_v29 = vsub.s32 2, %v2487_v20 }
 0x2b2   : > { %1974 = vmatpush3.bf16.msra.mxu0 %v2535_v53  ;;  %v1987_v53 = vpack.c.bf16 %v1127_v6, %v1126_v5 }
 0x2b3   : > { %v883_v56 = vmax.f32 %v880_v51, 0.0  ;;  %v963_v57 = vsel %vm377_vm2, %v961_v48, %v962_v54  ;;  %1976 = vmatprep.subr.bf16.mxu0 %v1975_v47  ;;  %v1136_v58 = vsel %vm392_vm3, %v1134_v52, %v1135_v55  ;;  %v1221_v31 = vrot.slane %v2493_v22, %v1220_v29 }
 0x2b4   : > { %1753 = vmatprep.mubr.f32.mxu1 %v963_v57  ;;  %1823 = vmatprep.mubr.f32.mxu0 %v1136_v58 }
 0x2b5   : > { %886 = vst [vmem:[#allocation3 + $0x10] sm:$0x3] %v883_v56 }
 0x2b6   : > { %1978 = vmatpush3.bf16.msra.mxu0 %v1975_v47 }
 0x2b7   : > { %1980 = vmatprep.subr.bf16.mxu0 %v1979_v59 }
 0x2ba   : > { %1982 = vmatpush3.bf16.msra.mxu0 %v1979_v59 }
 0x2bb   : > { %1984 = vmatprep.subr.bf16.mxu0 %v1983_v63 }
 0x2bc   : > { %v910_v7 = vld [vmem:[#allocation3 + $0x10] sm:$0x3] }
 0x2bd   : > { %v919_v10 = vsel %vm904_vm12, %v910_v7, 0.0 }
 0x2be   : > { %922 = vst [vmem:[#allocation3 + $0x10] sm:$0x3] %v919_v10  ;;  %1986 = vmatpush3.bf16.msra.mxu0 %v1983_v63 }
 0x2bf   : > { %1988 = vmatprep.subr.bf16.mxu0 %v1987_v53 }
 0x2c2   : > { %1990 = vmatpush3.bf16.msra.mxu0 %v1987_v53 }
 0x2c3   : > { %1992 = vmatprep.subr.bf16.mxu0 %v1991_v12 }
 0x2c5   : > { %v925_v19 = vld [vmem:[#allocation3 + $0x10] sm:$0x3] }
 0x2c6   : > { %v964_v21 = vrot.slane %v925_v19, 1  ;;  %1994 = vmatpush3.bf16.msra.mxu0 %v1991_v12  ;;  %v1137_v3 = vrot.slane %v925_v19, 2 }
 0x2c7   : > { %1996 = vmatprep.subr.bf16.mxu0 %v1995_v44 }
 0x2c8   : > { %v965_v24 = vsel %vm377_vm2, %v962_v54, %v964_v21  ;;  %v1138_v4 = vsel %vm392_vm3, %v1135_v55, %v1137_v3 }
 0x2c9   : > { %1754 = vmatmul.mubr.f32.vlgmr.msra.gmra.mrb[12].mxu1 %v965_v24 }
 0x2ca   : > { %1998 = vmatpush3.bf16.msra.mxu0 %v1995_v44  ;;  %1827 = vmatpush3.msk.msra.mxu1 %vm431_vm1, %v2541_v11  ;;  %v1230_v11 = vrot.slane %v2493_v22, %v1229_v26 }
 0x2cb   : > { %2000 = vmatprep.subr.bf16.mxu0 %v1999_v23  ;;  %1828 = vmatprep.mubr.msk.f32.mxu1 %vm407_vm6, %v1234_v25 }
 0x2cd   : > { %1829 = vmatmul.mubr.msk.f32.vlgmr.msra.gmra.mrb[14].mxu1 %vm407_vm6, %v1236_v2 }
 0x2ce   : > { %2002 = vmatpush3.bf16.msra.mxu0 %v1999_v23 }
 0x2d1   : > { %1824 = vmatmul.mubr.f32.vlgmr.msra.gmra.mrb[12].mxu0 %v1138_v4 }
 0x39c   : > { %v1755_v27 = vpop.f32.mrb[12].mxu1 }
 0x39d   : > { %v1034_v28 = vpop.f32.mrb[13].mxu1 }
 0x3a0   : > { %v1830_v30 = vpop.f32.mrb[14].mxu1 }
 0x3a1   : > { %v1310_v1 = vpop.f32.mrb[15].mxu1  ;;  %v1316_v32 = vadd.f32 %v1830_v30, %v1230_v11 }
 0x3a2   : > { %v1311_v34 = vadd.f32 %v1310_v1, %v1230_v11 }
 0x3a3   : > { %v1320_v39 = vmax.f32 %v1316_v32, 0.0 }
 0x3a4   : > { %v1825_v33 = vpop.f32.mrb[12].mxu0  ;;  %v1319_v20 = vmax.f32 %v1311_v34, 0.0 }
 0x3a5   : > { %v2003_v35 = vadd.f32 %v1825_v33, %v1755_v27  ;;  %v1207_v36 = vpop.f32.mrb[13].mxu0 }
 0x3a6   : > { %v2004_v37 = vadd.f32 %v1207_v36, %v1034_v28 }
 0x3a7   : > { %v1223_v38 = vadd.f32 %v2003_v35, %v1221_v31 }
 0x3a8   : > { %v1222_v40 = vadd.f32 %v2004_v37, %v1221_v31 }
 0x3a9   : > { %v1225_v41 = vmax.f32 %v1223_v38, 0.0 }
 0x3aa   : > { %v1224_v42 = vmax.f32 %v1222_v40, 0.0 }
 0x3ab   : > { %v1322_v43 = vadd.f32 %v1320_v39, %v1225_v41 }
 0x3ac   : > { %v1321_v22 = vadd.f32 %v1319_v20, %v1224_v42 }
 0x3ad   : > { %1324 = vst [vmem:[%s341_s11 + $0x8] sm:$0xff] %v1322_v43 }
 0x3ae   : > { %1323 = vst [vmem:[%s341_s11] sm:$0xff] %v1321_v22 }
 0x3af   : > { %2164 = shalt.err (!%p2161_p6)
}
 0x3b0   : > { %s2165_s13 = scalar_lea.hbm %s2577_s19, 256  ;;  %s2169_s29 = scalar_lea.hbm %s2632_s6, 512 }
 0x3b1   : > { %p2166_p7 = scmp.ne.s32.totalorder %s2577_s19, %s2165_s13  ;;  %p2170_p0 = scmp.lt.u32.totalorder %s2577_s19, %s2632_s6 }
 0x3b2   : > { %p2171_p4 = scmp.lt.u32.totalorder %s2169_s29, %s2165_s13  ;;  %p2173_p13 = scmp.lt.u32.totalorder %s2165_s13, %s2577_s19 }
 0x3b3   : > { %p2167_p9 = pnand %p2166_p7, %p2648_p8 }
 0x3b4   : > { %p2172_p1 = por %p2171_p4, %p2170_p0 }
 0x3b5   : > { %p2168_p12 = pneg %p2167_p9 }
 0x3b6   : > { %p2174_p10 = por %p2173_p13, %p2172_p1 }
 0x3b8   : > { %p2175_p11 = pnand %p2174_p10, %p2168_p12 }
 0x3ba   : > { %2178 = shalt.err (!%p2175_p11)
}
 0x3bb   : > { %s2250_s17 = smov 128  }
 0x3bc   : > { %2016 = dma.vmem_to_hbm [thread:$0]  (%p2648_p8), %s2572_s12, 256, %s2577_s19, %s2579_s20, %s2250_s17, %s2250_s17, %s2248_s30  }
 0x3bd PF: > { %p2033_p2 = scmp.ge.s32.totalorder %s2237_s26, 2  ;;  %s1356_s16 = sand.u32 1, %s2217_s21  }
 0x3be   : > { %p2649_p3 = scmp.ne.s32.totalorder %s2642_s9, 0  ;;  %s1357_s18 = scalar_lea.sflag [#allocation6], %s1356_s16 }
 0x3c0   : > { %p2026_p5 = pnand %p2033_p2, %p2649_p3 }
 0x3c2   : > { %2212 = dma.done.wait (!%p2026_p5), %s1357_s18, 256  }
 0x3c3   : > { %2214 = vsyncadd (!%p2026_p5), %s1357_s18, 4294967040  ;;  %s21_s26 = sadd.s32 1, %s2237_s26   ;;  %s2650_s24 = sld [smem:[#allocation13_spill]] }
 0x3c4   : > { %p18_p6 = scmp.ge.s32.totalorder %s21_s26, 4   ;;  %s2651_s25 = sld [smem:[#allocation14_spill]] }
 0x3c5   : > { %s2652_s21 = smov %s2221_s22  ;;  %s2653_s22 = smov %s2225_s23 }
 0x3c6   : > { %s2654_s23 = smov %s2339_s10  ;;  %20 = sbr.rel (!%p18_p6) target bundleno = 6 (0x6), region = 96 }
 0x3cd   :  { %1362 = vsyncpa [#allocation5], 1 }
 0x3ce   :  { %1364 = vsyncpa [#allocation5 + $0x1], 1 }
 0x3cf   :  { %1365 = vsyncpa [#allocation8], 1 }
 0x3d0   :  { %1366 = vsyncpa [#allocation6], 1 }
 0x3d1   :  { %1368 = vsyncpa [#allocation6 + $0x1], 1 }

// kernel: tpu_custom_call.1
= control target key start
LH: loop header
LB: loop body
LE: loop exit
PB: predicated region body
PF: predicated region fallthrough
CT: control target
= control target key end

     0   :  { %11 = vsyncpa [#allocation5], 0  ;;  %s2549_s0 = inlined_call_operand.vmem [shape: f32[2,24,4], index: 0, kind: input, shape index: {}]   ;;  %s2550_s1 = inlined_call_operand.vmem [shape: f32[12,128], index: 1, kind: input, shape index: {}]   ;;  %s2551_s2 = inlined_call_operand.hbm [shape: f32[384,128], index: 2, kind: input, shape index: {}]   ;;  %s2552_s3 = inlined_call_operand.hbm [shape: f32[384,128], index: 3, kind: input, shape index: {}]   ;;  %s2553_s4 = inlined_call_operand.vmem [shape: f32[4,128], index: 4, kind: input, shape index: {}]   ;;  %s2554_s5 = inlined_call_operand.vmem [shape: f32[4,128], index: 5, kind: input, shape index: {}]   ;;  %s2555_s6 = inlined_call_operand.hbm [shape: f32[2,16,128], index: 6, kind: output, shape index: {}]  }
   0x1   :  { %12 = vsyncpa [#allocation8], 0 }
   0x2   :  { %13 = vsyncpa [#allocation6], 0 }
   0x3   :  { %15 = vsyncpa [#allocation6 + $0x1], 0  ;;  %s2209_s21 = smov 0   ;;  %s2211_s22 = smov 0  }
   0x4   :  { %s2213_s23 = smov 0   ;;  %s2215_s24 = smov 0  }
   0x5   :  { %s2217_s25 = smov 0   ;;  %s2219_s26 = smov 0  }
   0x6 LB: > { %2562 = sst [smem:[#allocation13_spill]] %s2156_s25  ;;  %s1365_s27 = sadd.s32 4294967295, %s2160_s26   ;;  %s2160_s26 = sphi %s2219_s26, %s21_s26   ;;  %s2156_s25 = sphi %s2217_s25, %s2574_s25   ;;  %s2152_s24 = sphi %s2215_s24, %s2573_s24   ;;  %s2148_s23 = sphi %s2213_s23, %s2577_s23   ;;  %s2144_s22 = sphi %s2211_s22, %s2576_s22   ;;  %s2140_s21 = sphi %s2209_s21, %s2575_s21  }
   0x7   : > { %s1366_s28 = sadd.s32 4294967294, %s2160_s26   ;;  %s33_s29 = sadd.s32 1, %s2156_s25 }
   0x8   : > { %s173_s30 = sadd.s32 1, %s2148_s23  ;;  %p35_p0 = scmp.ge.s32.totalorder %s33_s29, 2 }
   0x9   : > { %p183_p1 = scmp.ne.s32.totalorder %s2148_s23, %s2144_s22  ;;  %p184_p2 = scmp.eq.s32.totalorder %s1365_s27, 1 }
   0xa   : > { %p189_p3 = scmp.ne.s32.totalorder %s2144_s22, %s2140_s21  ;;  %s2579_s29 = smov (%p35_p0, %s33_s29), 0 }
   0xb   : > { %2563 = sst [smem:[#allocation14_spill]] %s2579_s29  ;;  %p2249_p4 = por %p184_p2, %p183_p1 }
   0xc   : > { %p190_p5 = scmp.eq.s32.totalorder %s1366_s28, 1  ;;  %s168_s8 = ssub.s32 %s2156_s25, %s2579_s29 }
   0xd   : > { %s2564_s7 = scalar_select %p2249_p4, 1, 0 }
   0xe   : > { %p1367_p6 = scmp.ge.s32.totalorder %s2160_s26, 1  ;;  %p171_p7 = scmp.eq.s32.totalorder %s168_s8, 0 }
   0xf   : > { %p2256_p8 = por %p190_p5, %p189_p3  ;;  %p197_p9 = scmp.lt.s32.totalorder %s2160_s26, 3 }
  0x10   : > { %s2262_s10 = scalar_select %p171_p7, %s2148_s23, %s173_s30  }
  0x11   : > { %s2565_s9 = scalar_select %p2256_p8, 1, 0 }
  0x12   : > { %p2264_p10 = pnand %p1367_p6, %p197_p9  ;;  %p2268_p11 = scmp.eq.s32.totalorder %s1365_s27, 0 }
  0x13   : > { %s2162_s13 = smov [#allocation4]   ;;  %s2163_s16 = smov [#allocation7]  }
  0x14   : > { %s2566_s11 = scalar_select %p2264_p10, 1, 0 }
  0x15   : > { %s2567_s12 = scalar_select %p2268_p11, 1, 0 }
  0x16   : > { %p1941_p12 = pneg %p2264_p10  ;;  %s212_s14 = sshll.u32 %s2162_s13, 4  ;;  %s213_s14 = int_to_ptr.vmem [resolvable:$true] %s212_s14 }
  0x17   : > { %s225_s17 = sshll.u32 %s2163_s16, 4  ;;  %s2018_s20 = scalar_lea.hbm %s2551_s2, 6144  ;;  %s2280_s17 = int_to_ptr.vmem [resolvable:$true] %s225_s17 }
  0x18   : > { %p2276_p13 = pnand %p2268_p11, %p1941_p12  ;;  %p2019_p0 = scmp.ne.s32.totalorder %s2551_s2, %s2018_s20 }
  0x19   : > { %p2025_p5 = scmp.lt.u32.totalorder %s2018_s20, %s2551_s2 }
  0x1a   : > { %p2020_p1 = pneg %p2276_p13 }
  0x1c   : > { %p2021_p2 = pnand %p2020_p1, %p2019_p0 }
  0x1e   : > { %p2022_p3 = pneg %p2021_p2 }
  0x20   : > { %p2027_p6 = pnand %p2025_p5, %p2022_p3 }
  0x22   : > { %2030 = shalt.err (!%p2027_p6)
}
  0x23   : > { %s2031_s13 = scalar_lea.vmem %s213_s14, 6144  ;;  %p2039_p8 = scmp.lt.s32.totalorder %s213_s14, %s213_s14 }
  0x24   : > { %p2032_p7 = scmp.ne.s32.totalorder %s213_s14, %s2031_s13  ;;  %p2040_p4 = scmp.lt.s32.totalorder %s2031_s13, %s2031_s13 }
  0x26   : > { %p2034_p9 = pnand %p2032_p7, %p2020_p1  ;;  %p2041_p11 = por %p2040_p4, %p2039_p8 }
  0x28   : > { %p2035_p12 = pneg %p2034_p9 }
  0x2a   : > { %p2042_p10 = pnand %p2041_p11, %p2035_p12 }
  0x2c   : > { %2045 = shalt.err (!%p2042_p10)
}
  0x2d   : > { %s2164_s16 = smov 128   ;;  %s2165_s18 = smov 8  }
  0x2e   : > { %1944 = dma.hbm_to_vmem [thread:$0]  (!%p2276_p13), %s2551_s2, 6144, %s213_s14, [#allocation5], %s2164_s16, %s2164_s16, %s2165_s18  }
  0x2f   : > { %s2046_s30 = scalar_lea.hbm %s2552_s3, 6144 }
  0x30   : > { %p2047_p0 = scmp.ne.s32.totalorder %s2552_s3, %s2046_s30  ;;  %p2053_p10 = scmp.lt.u32.totalorder %s2046_s30, %s2552_s3 }
  0x32   : > { %p2049_p4 = pnand %p2047_p0, %p2020_p1 }
  0x34   : > { %p2050_p8 = pneg %p2049_p4 }
  0x36   : > { %p2055_p11 = pnand %p2053_p10, %p2050_p8 }
  0x38   : > { %2058 = shalt.err (!%p2055_p11)
}
  0x39   : > { %s2059_s14 = scalar_lea.vmem %s2280_s17, 6144  ;;  %p2067_p6 = scmp.lt.s32.totalorder %s2280_s17, %s2280_s17 }
  0x3a   : > { %p2060_p2 = scmp.ne.s32.totalorder %s2280_s17, %s2059_s14  ;;  %p2068_p7 = scmp.lt.s32.totalorder %s2059_s14, %s2059_s14 }
  0x3c   : > { %p2062_p3 = pnand %p2060_p2, %p2020_p1  ;;  %p2069_p9 = por %p2068_p7, %p2067_p6 }
  0x3e   : > { %p2063_p5 = pneg %p2062_p3 }
  0x40   : > { %p2070_p12 = pnand %p2069_p9, %p2063_p5 }
  0x42   : > { %2073 = shalt.err (!%p2070_p12)
}
  0x43   : > { %1947 = dma.hbm_to_vmem [thread:$0]  (!%p2276_p13), %s2552_s3, 6144, %s2280_s17, [#allocation8], %s2164_s16, %s2164_s16, %s2165_s18  }
  0x44   : > { %p2569_p0 = scmp.ne.s32.totalorder %s2566_s11, 0 }
  0x45   : > { %p2570_p4 = scmp.ne.s32.totalorder (!%p2569_p0), %s2567_s12, 0 }
  0x46   : > { %255 = sbr.rel (%p2569_p0) target bundleno = 957 (0x3bd), region = 44 }
  0x4d   : > { %2127 = dma.done.wait (%p2570_p4), [#allocation5], 6144  }
  0x4e   : > { %2129 = vsyncadd (%p2570_p4), [#allocation5], 4294961152 }
  0x4f   : > { %2131 = dma.done.wait (%p2570_p4), [#allocation8], 6144  }
  0x50   : > { %2133 = vsyncadd (%p2570_p4), [#allocation8], 4294961152  ;;  %p289_p1 = scmp.lt.s32.totalorder %s2152_s24, 1  ;;  %v2166_v0 = vmov 0.0|0.0   ;;  %vm2167_vm0 = vmmov 0   ;;  %v2168_v1 = vmov 0.0  }
  0x51   : > { %1754 = vmatprep.subr.bf16.mxu0 %v2166_v0  ;;  %1758 = vmatprep.subr.bf16.mxu1 %v2166_v0  ;;  %vm358_vm1 = vcmask 1043456   ;;  %vm304_vm2 = vcmask 1046528   ;;  %v342_v9 = vld [vmem:[%s2550_s1] sm:$0xff]  ;;  %vm319_vm3 = vcmask 1045504   ;;  %v343_v12 = vld [vmem:[%s2550_s1 + $0x8] sm:$0xf] }
  0x52   : > { %s290_s15 = scalar_select %p289_p1, %s2152_s24, 1  ;;  %1512 = vmatprep.mubr.msk.f32.mxu0 %vm2167_vm0, %v2168_v1  ;;  %1553 = vmatprep.mubr.msk.f32.mxu1 %vm2167_vm0, %v2168_v1  ;;  %vm2169_vm4 = vmmov 1   ;;  %v1755_v15 = vpack.c.bf16 %v343_v12, %v342_v9  ;;  %v507_v18 = vld [vmem:[#allocation4 + $0x80] sm:$0xff]  ;;  %v508_v19 = vld [vmem:[#allocation4 + $0x88] sm:$0xff]  ;;  %vm334_vm6 = vcmask 31744   ;;  %vm338_vm7 = vcmask 64512  }
  0x53   : > { %vm1756_vm5 = vmpackc.low %vm358_vm1, %vm2169_vm4  ;;  %s2170_s28 = smov 4   ;;  %v1759_v20 = vpack.c.bf16 %v508_v19, %v507_v18  ;;  %s2171_s30 = smov 8   ;;  %v491_v23 = vld [vmem:[#allocation4] sm:$0xff]  ;;  %v492_v24 = vld [vmem:[#allocation4 + $0x8] sm:$0xff]  ;;  %vm348_vm8 = vcmask 97280   ;;  %v344_v19 = vlaneseq  ;;  %vm1158_vm13 = vcmask 1044480  }
  0x54   : > { %s1930_s11 = smul.u32 24, %s290_s15  ;;  %1757 = vmatpush3.bf16.msk.msra.mxu0 %vm1756_vm5, %v1755_v15  ;;  %v1783_v25 = vpack.c.bf16 %v492_v24, %v491_v23  ;;  %v493_v29 = vld [vmem:[#allocation4 + $0x10] sm:$0xff]  ;;  %v494_v30 = vld [vmem:[#allocation4 + $0x18] sm:$0xff]  ;;  %v495_v36 = vld [vmem:[#allocation4 + $0x20] sm:$0xff]  ;;  %s286_s29 = sand.u32 1, %s2144_s22  }
  0x55   : > { %1782 = vmatprep.subr.bf16.mxu0 %v2166_v0  ;;  %1760 = vmatpush3.bf16.msra.mxu1 %v1759_v20  ;;  %v1786_v33 = vpack.c.bf16 %v494_v30, %v493_v29  ;;  %v496_v37 = vld [vmem:[#allocation4 + $0x28] sm:$0xff]  ;;  %v509_v42 = vld [vmem:[#allocation4 + $0x90] sm:$0xff]  ;;  %v510_v43 = vld [vmem:[#allocation4 + $0x98] sm:$0xff]  ;;  %v2410_v20 = vshrl.u32 %v344_v19, 7  ;;  %s1374_s15 = sshll.u32 %s286_s29, 4  ;;  %s1388_s17 = sshll.u32 %s2152_s24, 8 }
  0x56   : > { %s293_s16 = scalar_lea.vmem %s2549_s0, %s1930_s11  ;;  %1761 = vmatprep.subr.bf16.mxu1 %v2166_v0  ;;  %v1789_v41 = vpack.c.bf16 %v496_v37, %v495_v36  ;;  %v1762_v44 = vpack.c.bf16 %v510_v43, %v509_v42  ;;  %v497_v45 = vld [vmem:[#allocation4 + $0x30] sm:$0xff]  ;;  %v498_v46 = vld [vmem:[#allocation4 + $0x38] sm:$0xff]  ;;  %v511_v48 = vld [vmem:[#allocation4 + $0xa0] sm:$0xff]  ;;  %s288_s11 = scalar_lea.vmem [#allocation9], %s1374_s15 }
  0x57   : > { %v2350_v2 = vld [vmem:[%s293_s16] sm:$0xff]  ;;  %v2352_v3 = vld [vmem:[%s293_s16 + $0x8] sm:$0xff]  ;;  %v2354_v4 = vld [vmem:[%s293_s16 + $0x10] sm:$0xff]  ;;  %v1792_v47 = vpack.c.bf16 %v498_v46, %v497_v45  ;;  %v461_v24 = vadd.s32 4294967294, %v2410_v20  ;;  %s1268_s12 = sshll.u32 %s288_s11, 4  ;;  %s2500_s19 = scalar_lea.hbm %s2555_s6, %s1388_s17  ;;  %s2495_s12 = int_to_ptr.vmem [resolvable:$true] %s1268_s12 }
  0x58   : > { %v305_v5 = vrot.slane %v2350_v2, 1  ;;  %v306_v6 = vrot.slane %v2352_v3, 1  ;;  %v308_v7 = vrot.slane %v2354_v4, 1  ;;  %v320_v8 = vrot.slane %v2350_v2, 2  ;;  %v512_v49 = vld [vmem:[#allocation4 + $0xa8] sm:$0xff]  ;;  %v499_v51 = vld [vmem:[#allocation4 + $0x40] sm:$0xff] }
  0x59   : > { %v321_v10 = vrot.slane %v2352_v3, 2  ;;  %v323_v11 = vrot.slane %v2354_v4, 2  ;;  %1763 = vmatpush3.bf16.msra.mxu1 %v1762_v44  ;;  %v1765_v50 = vpack.c.bf16 %v512_v49, %v511_v48  ;;  %v500_v52 = vld [vmem:[#allocation4 + $0x48] sm:$0xff]  ;;  %v513_v54 = vld [vmem:[#allocation4 + $0xb0] sm:$0xff]  ;;  %v514_v55 = vld [vmem:[#allocation4 + $0xb8] sm:$0xff]  ;;  %vm464_vm9 = vcmp.ge.s32.totalorder %v461_v24, 0 }
  0x5a   : > { %v307_v13 = vsel %vm304_vm2, %v305_v5, %v306_v6  ;;  %v309_v14 = vsel %vm304_vm2, %v306_v6, %v308_v7  ;;  %1764 = vmatprep.subr.bf16.mxu1 %v2166_v0  ;;  %v1795_v53 = vpack.c.bf16 %v500_v52, %v499_v51  ;;  %v1768_v56 = vpack.c.bf16 %v514_v55, %v513_v54  ;;  %v501_v57 = vld [vmem:[#allocation4 + $0x50] sm:$0xff]  ;;  %v502_v58 = vld [vmem:[#allocation4 + $0x58] sm:$0xff]  ;;  %v515_v60 = vld [vmem:[#allocation4 + $0xc0] sm:$0xff]  ;;  %s2502_s20 = scalar_lea.sflag [#allocation6], %s286_s29  ;;  %s2074_s27 = scalar_lea.vmem %s2495_s12, 256 }
  0x5b   : > { %310 = vrot.lane.b32.xlu0 %v307_v13, %s2170_s28  ;;  %312 = vrot.lane.b32.xlu1 %v309_v14, %s2170_s28  ;;  %v322_v16 = vsel %vm319_vm3, %v320_v8, %v321_v10  ;;  %v324_v17 = vsel %vm319_vm3, %v321_v10, %v323_v11  ;;  %v1798_v59 = vpack.c.bf16 %v502_v58, %v501_v57  ;;  %v516_v61 = vld [vmem:[#allocation4 + $0xc8] sm:$0xff]  ;;  %v503_v63 = vld [vmem:[#allocation4 + $0x60] sm:$0xff]  ;;  %v518_v8 = vld [vmem:[#allocation4 + $0xd8] sm:$0xff]  ;;  %v2427_v44 = vadd.s32 16, %v2410_v20  ;;  %p2075_p13 = scmp.ne.s32.totalorder %s2495_s12, %s2074_s27  ;;  %p2571_p8 = scmp.ne.s32.totalorder %s2564_s7, 0 }
  0x5c   : > { %v1771_v62 = vpack.c.bf16 %v516_v61, %v515_v60  ;;  %v504_v5 = vld [vmem:[#allocation4 + $0x68] sm:$0xff]  ;;  %v505_v10 = vld [vmem:[#allocation4 + $0x70] sm:$0xff]  ;;  %v519_v13 = vld [vmem:[#allocation4 + $0xe0] sm:$0xff]  ;;  %s2172_s24 = smov [#allocation9]  }
  0x5d   : > { %1766 = vmatpush3.bf16.msra.mxu1 %v1765_v50  ;;  %v1801_v6 = vpack.c.bf16 %v504_v5, %v503_v63  ;;  %v520_v14 = vld [vmem:[#allocation4 + $0xe8] sm:$0xff]  ;;  %v696_v45 = vld [vmem:[#allocation4 + $0x110] sm:$0xff]  ;;  %v697_v46 = vld [vmem:[#allocation4 + $0x118] sm:$0xff]  ;;  %v463_v51 = vadd.s32 4294967294, %v2427_v44  ;;  %p2076_p10 = pnand %p2075_p13, %p2571_p8 }
  0x5e   : > { %1767 = vmatprep.subr.bf16.mxu1 %v2166_v0  ;;  %v1777_v15 = vpack.c.bf16 %v520_v14, %v519_v13  ;;  %v1810_v50 = vpack.c.bf16 %v697_v46, %v696_v45  ;;  %v698_v52 = vld [vmem:[#allocation4 + $0x120] sm:$0xff]  ;;  %v700_v55 = vld [vmem:[#allocation4 + $0x130] sm:$0xff]  ;;  %v703_v61 = vld [vmem:[#allocation4 + $0x148] sm:$0xff] }
  0x5f   : > { %325 = vrot.lane.b32.xlu0 %v322_v16, %s2171_s30  ;;  %327 = vrot.lane.b32.xlu1 %v324_v17, %s2171_s30  ;;  %v521_v16 = vld [vmem:[#allocation4 + $0xf0] sm:$0xff]  ;;  %v522_v17 = vld [vmem:[#allocation4 + $0xf8] sm:$0xff]  ;;  %vm469_vm10 = vcmp.lt.s32.totalorder %v463_v51, 16  ;;  %v702_v60 = vld [vmem:[#allocation4 + $0x140] sm:$0xff]  ;;  %p2077_p11 = pneg %p2076_p10 }
  0x60   : > { %v1780_v18 = vpack.c.bf16 %v522_v17, %v521_v16  ;;  %v704_v63 = vld [vmem:[#allocation4 + $0x150] sm:$0xff]  ;;  %v705_v5 = vld [vmem:[#allocation4 + $0x158] sm:$0xff]  ;;  %v854_v19 = vld [vmem:[#allocation7 + $0x8] sm:$0xff] }
  0x61   : > { %1769 = vmatpush3.bf16.msra.mxu1 %v1768_v56  ;;  %v701_v56 = vld [vmem:[#allocation4 + $0x138] sm:$0xff]  ;;  %v708_v13 = vld [vmem:[#allocation4 + $0x170] sm:$0xff]  ;;  %v873_v51 = vld [vmem:[#allocation7 + $0xa0] sm:$0xff] }
  0x62   : > { %1770 = vmatprep.subr.bf16.mxu1 %v2166_v0  ;;  %v709_v14 = vld [vmem:[#allocation4 + $0x178] sm:$0xff]  ;;  %v871_v45 = vld [vmem:[#allocation7 + $0x90] sm:$0xff] }
  0x63   : > { %314 = vrot.lane.b32.xlu0 %v308_v7, %s2170_s28  ;;  %329 = vrot.lane.b32.xlu1 %v323_v11, %s2171_s30  ;;  %v517_v7 = vld [vmem:[#allocation4 + $0xd0] sm:$0xff]  ;;  %v506_v11 = vld [vmem:[#allocation4 + $0x78] sm:$0xff]  ;;  %s2078_s28 = sshll.u32 %s2172_s24, 4  ;;  %s2079_s28 = int_to_ptr.vmem [resolvable:$false] %s2078_s28 }
  0x64   : > { %v1774_v9 = vpack.c.bf16 %v518_v8, %v517_v7  ;;  %v1804_v12 = vpack.c.bf16 %v506_v11, %v505_v10  ;;  %v1822_v8 = vpack.c.bf16 %v705_v5, %v704_v63  ;;  %v707_v10 = vld [vmem:[#allocation4 + $0x168] sm:$0xff]  ;;  %v872_v46 = vld [vmem:[#allocation7 + $0x98] sm:$0xff]  ;;  %v881_v5 = vld [vmem:[#allocation7 + $0xe0] sm:$0xff]  ;;  %s2080_s8 = scalar_lea.vmem %s2079_s28, 512  ;;  %p2081_p2 = scmp.lt.s32.totalorder %s2495_s12, %s2079_s28 }
  0x65   : > { %1772 = vmatpush3.bf16.msra.mxu1 %v1771_v62  ;;  %v1819_v62 = vpack.c.bf16 %v703_v61, %v702_v60  ;;  %v879_v61 = vld [vmem:[#allocation7 + $0xd0] sm:$0xff]  ;;  %p2082_p3 = scmp.lt.s32.totalorder %s2080_s8, %s2074_s27 }
  0x66   : > { %1773 = vmatprep.subr.bf16.mxu1 %v2166_v0 }
  0x67   : > { %p2083_p5 = por %p2082_p3, %p2081_p2 }
  0x69   : > { %1775 = vmatpush3.bf16.msra.mxu1 %v1774_v9  ;;  %v706_v9 = vld [vmem:[#allocation4 + $0x160] sm:$0xff]  ;;  %p2084_p6 = pnand %p2083_p5, %p2077_p11 }
  0x6a   : > { %1776 = vmatprep.subr.bf16.mxu1 %v2166_v0 }
  0x6d   : > { %1778 = vmatpush3.bf16.msra.mxu1 %v1777_v15  ;;  %v1828_v15 = vpack.c.bf16 %v709_v14, %v708_v13 }
  0x6e   : > { %1779 = vmatprep.subr.bf16.mxu1 %v2166_v0 }
  0x71   : > { %1781 = vmatpush3.bf16.msra.mxu1 %v1780_v18  ;;  %v853_v18 = vld [vmem:[#allocation7] sm:$0xff] }
  0x72   : > { %1806 = vmatprep.subr.bf16.mxu1 %v2166_v0 }
  0xcd   : > { %v311_v21 = vpop.permute.xlu0 %310  ;;  %v313_v22 = vpop.permute.xlu1 %312 }
  0xce   : > { %v335_v26 = vsel %vm334_vm6, %v2350_v2, %v311_v21  ;;  %v336_v32 = vsel %vm334_vm6, %v2352_v3, %v313_v22  ;;  %v346_v21 = vsub.s32 0, %v2410_v20  ;;  %v2416_v22 = vld [vmem:[%s2554_s5] sm:$0xf] }
  0xd0   : > { %v347_v23 = vrot.slane %v2416_v22, %v346_v21  ;;  %v1862_v21 = vpack.c.bf16 %v854_v19, %v853_v18 }
  0xd1   : > { %v326_v27 = vpop.permute.xlu0 %325  ;;  %v328_v28 = vpop.permute.xlu1 %327 }
  0xd2   : > { %v339_v31 = vsel %vm338_vm7, %v335_v26, %v326_v27  ;;  %v340_v38 = vsel %vm338_vm7, %v336_v32, %v328_v28 }
  0xd3   : > { %1513 = vmatmul.mubr.msk.f32.vlgmr.msra.gmra.mrb[0].mxu0 %vm348_vm8, %v339_v31 }
  0xd4   : > { %1515 = vmatprep.mubr.msk.f32.mxu0 %vm2167_vm0, %v2168_v1  ;;  %1784 = vmatpush3.bf16.msra.mxu0 %v1783_v25 }
  0xd5   : > { %v315_v34 = vpop.permute.xlu0 %314  ;;  %v330_v35 = vpop.permute.xlu1 %329  ;;  %1785 = vmatprep.subr.bf16.mxu0 %v2166_v0 }
  0xd6   : > { %v337_v39 = vsel %vm334_vm6, %v2354_v4, %v315_v34  ;;  %v695_v34 = vld [vmem:[#allocation4 + $0x108] sm:$0xff] }
  0xd7   : > { %1516 = vmatmul.mubr.msk.f32.gmra.mrb[2].mxu0 %vm348_vm8, %v340_v38  ;;  %v341_v40 = vsel %vm338_vm7, %v337_v39, %v330_v35 }
  0xd8   : > { %1518 = vmatprep.mubr.msk.f32.mxu0 %vm2167_vm0, %v2168_v1  ;;  %1787 = vmatpush3.bf16.msra.mxu0 %v1786_v33  ;;  %v694_v33 = vld [vmem:[#allocation4 + $0x100] sm:$0xff] }
  0xd9   : > { %1788 = vmatprep.subr.bf16.mxu0 %v2166_v0  ;;  %v1807_v38 = vpack.c.bf16 %v695_v34, %v694_v33  ;;  %v863_v33 = vld [vmem:[#allocation7 + $0x50] sm:$0xff]  ;;  %v864_v34 = vld [vmem:[#allocation7 + $0x58] sm:$0xff] }
  0xdb   : > { %1519 = vmatmul.mubr.msk.f32.gmra.mrb[4].mxu0 %vm348_vm8, %v341_v40 }
  0xdc   : > { %1790 = vmatpush3.bf16.msra.mxu0 %v1789_v41  ;;  %1594 = vmatprep.mubr.msk.f32.mxu0 %vm2167_vm0, %v2168_v1 }
  0xdd   : > { %1791 = vmatprep.subr.bf16.mxu0 %v2166_v0 }
  0xe0   : > { %1793 = vmatpush3.bf16.msra.mxu0 %v1792_v47 }
  0xe1   : > { %1794 = vmatprep.subr.bf16.mxu0 %v2166_v0 }
  0xe4   : > { %1796 = vmatpush3.bf16.msra.mxu0 %v1795_v53  ;;  %v699_v53 = vld [vmem:[#allocation4 + $0x128] sm:$0xff] }
  0xe5   : > { %1797 = vmatprep.subr.bf16.mxu0 %v2166_v0  ;;  %v1813_v54 = vpack.c.bf16 %v699_v53, %v698_v52  ;;  %v874_v52 = vld [vmem:[#allocation7 + $0xa8] sm:$0xff] }
  0xe8   : > { %1799 = vmatpush3.bf16.msra.mxu0 %v1798_v59  ;;  %v1816_v59 = vpack.c.bf16 %v701_v56, %v700_v55  ;;  %v875_v55 = vld [vmem:[#allocation7 + $0xb0] sm:$0xff]  ;;  %v876_v56 = vld [vmem:[#allocation7 + $0xb8] sm:$0xff] }
  0xe9   : > { %1800 = vmatprep.subr.bf16.mxu0 %v2166_v0 }
  0xec   : > { %1802 = vmatpush3.bf16.msra.mxu0 %v1801_v6 }
  0xed   : > { %1803 = vmatprep.subr.bf16.mxu0 %v2166_v0 }
  0xf0   : > { %1805 = vmatpush3.bf16.msra.mxu0 %v1804_v12  ;;  %v1825_v12 = vpack.c.bf16 %v707_v10, %v706_v9  ;;  %v884_v9 = vld [vmem:[#allocation7 + $0xf8] sm:$0xff] }
  0xf1   : > { %1863 = vmatprep.subr.bf16.mxu0 %v1862_v21 }
 0x1a6   : > { %v428_v25 = vpop.f32.mrb[0].mxu0 }
 0x1a7   : > { %v429_v26 = vadd.f32 %v428_v25, %v347_v23  ;;  %v1514_v27 = vpop.f32.mrb[1].mxu0  ;;  %v857_v25 = vld [vmem:[#allocation7 + $0x20] sm:$0xff] }
 0x1a9   : > { %v442_v28 = vmax.f32 %v429_v26, 0.0  ;;  %v858_v26 = vld [vmem:[#allocation7 + $0x28] sm:$0xff] }
 0x1aa   : > { %v433_v29 = vpop.f32.mrb[2].mxu0  ;;  %v1870_v27 = vpack.c.bf16 %v858_v26, %v857_v25 }
 0x1ab   : > { %v482_v30 = vsel %vm464_vm9, %v442_v28, 0.0  ;;  %v434_v31 = vadd.f32 %v433_v29, %v347_v23  ;;  %v1517_v32 = vpop.f32.mrb[3].mxu0  ;;  %2016 = vmatmul.mubr.msk.f32.vlgmr.msra.gmra.mrb[6].mxu0 %vm464_vm9, %v442_v28  ;;  %v859_v28 = vld [vmem:[#allocation7 + $0x30] sm:$0xff]  ;;  %v860_v29 = vld [vmem:[#allocation7 + $0x38] sm:$0xff] }
 0x1ac   : > { %1597 = vmatprep.mubr.msk.f32.mxu0 %vm2167_vm0, %v2168_v1  ;;  %v710_v37 = vrot.slane %v482_v30, 2  ;;  %v526_v43 = vrot.slane %v482_v30, 1  ;;  %1865 = vmatpush3.bf16.msra.mxu0 %v1862_v21  ;;  %v1874_v30 = vpack.c.bf16 %v860_v29, %v859_v28  ;;  %v803_v28 = vsub.s32 1, %v2410_v20 }
 0x1ad   : > { %v2420_v35 = vmax.f32 %v434_v31, 0.0  ;;  %v862_v31 = vld [vmem:[#allocation7 + $0x48] sm:$0xff] }
 0x1ae   : > { %v438_v36 = vpop.f32.mrb[4].mxu0  ;;  %v804_v29 = vrot.slane %v2416_v22, %v803_v28 }
 0x1af   : > { %v439_v39 = vadd.f32 %v438_v36, %v347_v23  ;;  %v1520_v40 = vpop.f32.mrb[5].mxu0  ;;  %v527_v41 = vrot.slane %v2420_v35, 1  ;;  %v711_v42 = vrot.slane %v2420_v35, 2  ;;  %1598 = vmatmul.mubr.f32.gmra.mrb[8].mxu0 %v2420_v35  ;;  %v856_v23 = vld [vmem:[#allocation7 + $0x18] sm:$0xff]  ;;  %v1882_v35 = vpack.c.bf16 %v864_v34, %v863_v33  ;;  %v865_v36 = vld [vmem:[#allocation7 + $0x60] sm:$0xff] }
 0x1b0   : > { %1600 = vmatprep.mubr.msk.f32.mxu0 %vm2167_vm0, %v2168_v1 }
 0x1b1   : > { %v444_v47 = vmax.f32 %v439_v39, 0.0  ;;  %v528_v48 = vsel %vm304_vm2, %v526_v43, %v527_v41  ;;  %v712_v49 = vsel %vm319_vm3, %v710_v37, %v711_v42  ;;  %v866_v37 = vld [vmem:[#allocation7 + $0x68] sm:$0xff]  ;;  %v868_v43 = vld [vmem:[#allocation7 + $0x78] sm:$0xff] }
 0x1b2   : > { %1554 = vmatmul.mubr.f32.vlgmr.msra.gmra.mrb[0].mxu1 %v528_v48  ;;  %v870_v39 = vld [vmem:[#allocation7 + $0x88] sm:$0xff]  ;;  %v1886_v40 = vpack.c.bf16 %v866_v37, %v865_v36  ;;  %v1834_v48 = vpack.c.bf16 %v872_v46, %v871_v45 }
 0x1b3   : > { %447 = vst [vmem:[#allocation2 + $0x10] sm:$0xf] %v444_v47  ;;  %1808 = vmatpush3.bf16.msra.mxu1 %v1807_v38  ;;  %1556 = vmatprep.mubr.msk.f32.mxu1 %vm2167_vm0, %v2168_v1  ;;  %v869_v38 = vld [vmem:[#allocation7 + $0x80] sm:$0xff] }
 0x1b4   : > { %1809 = vmatprep.subr.bf16.mxu1 %v2166_v0 }
 0x1b7   : > { %1811 = vmatpush3.bf16.msra.mxu1 %v1810_v50  ;;  %v1046_v50 = vld [vmem:[#allocation7 + $0x108] sm:$0xff] }
 0x1b8   : > { %1812 = vmatprep.subr.bf16.mxu1 %v2166_v0 }
 0x1ba   : > { %v475_v57 = vld [vmem:[#allocation2 + $0x10] sm:$0xf] }
 0x1bb   : > { %v484_v58 = vsel %vm469_vm10, %v475_v57, 0.0  ;;  %1814 = vmatpush3.bf16.msra.mxu1 %v1813_v54  ;;  %v1838_v54 = vpack.c.bf16 %v874_v52, %v873_v51  ;;  %v1842_v57 = vpack.c.bf16 %v876_v56, %v875_v55 }
 0x1bc   : > { %487 = vst [vmem:[#allocation2 + $0x10] sm:$0xf] %v484_v58  ;;  %1815 = vmatprep.subr.bf16.mxu1 %v2166_v0  ;;  %v877_v58 = vld [vmem:[#allocation7 + $0xc0] sm:$0xff] }
 0x1bf   : > { %1817 = vmatpush3.bf16.msra.mxu1 %v1816_v59  ;;  %v878_v59 = vld [vmem:[#allocation7 + $0xc8] sm:$0xff] }
 0x1c0   : > { %1818 = vmatprep.subr.bf16.mxu1 %v2166_v0  ;;  %v1846_v60 = vpack.c.bf16 %v878_v59, %v877_v58 }
 0x1c3   : > { %v490_v6 = vld [vmem:[#allocation2 + $0x10] sm:$0xf]  ;;  %1820 = vmatpush3.bf16.msra.mxu1 %v1819_v62  ;;  %v880_v62 = vld [vmem:[#allocation7 + $0xd8] sm:$0xff] }
 0x1c4   : > { %v529_v7 = vrot.slane %v490_v6, 1  ;;  %1601 = vmatmul.mubr.f32.gmra.mrb[10].mxu0 %v490_v6  ;;  %1821 = vmatprep.subr.bf16.mxu1 %v2166_v0  ;;  %v713_v16 = vrot.slane %v490_v6, 2  ;;  %v1850_v63 = vpack.c.bf16 %v880_v62, %v879_v61  ;;  %v882_v6 = vld [vmem:[#allocation7 + $0xe8] sm:$0xff]  ;;  %v1052_v61 = vld [vmem:[#allocation7 + $0x138] sm:$0xff]  ;;  %v825_v62 = vadd.s32 4294967295, %v2427_v44 }
 0x1c6   : > { %v530_v11 = vsel %vm304_vm2, %v527_v41, %v529_v7  ;;  %v714_v17 = vsel %vm319_vm3, %v711_v42, %v713_v16  ;;  %v1830_v41 = vpack.c.bf16 %v870_v39, %v869_v38  ;;  %v867_v42 = vld [vmem:[#allocation7 + $0x70] sm:$0xff]  ;;  %v1048_v39 = vld [vmem:[#allocation7 + $0x118] sm:$0xff]  ;;  %vm831_vm12 = vcmp.lt.s32.totalorder %v825_v62, 16 }
 0x1c7   : > { %1557 = vmatmul.mubr.f32.gmra.mrb[2].mxu1 %v530_v11  ;;  %v1890_v47 = vpack.c.bf16 %v868_v43, %v867_v42  ;;  %v2464_v11 = vld [vmem:[%s2553_s4] sm:$0xf] }
 0x1c8   : > { %1559 = vmatprep.mubr.msk.f32.mxu1 %vm2167_vm0, %v2168_v1  ;;  %1823 = vmatpush3.bf16.msra.mxu1 %v1822_v8  ;;  %v1854_v8 = vpack.c.bf16 %v882_v6, %v881_v5  ;;  %v1047_v38 = vld [vmem:[#allocation7 + $0x110] sm:$0xff]  ;;  %v1053_v5 = vld [vmem:[#allocation7 + $0x140] sm:$0xff]  ;;  %v1054_v6 = vld [vmem:[#allocation7 + $0x148] sm:$0xff] }
 0x1c9   : > { %1824 = vmatprep.subr.bf16.mxu1 %v2166_v0 }
 0x1cb   : > { %1560 = vmatmul.mubr.f32.gmra.mrb[4].mxu1 %v529_v7  ;;  %v883_v7 = vld [vmem:[#allocation7 + $0xf0] sm:$0xff] }
 0x1cc   : > { %1826 = vmatpush3.bf16.msra.mxu1 %v1825_v12  ;;  %1635 = vmatprep.mubr.msk.f32.mxu1 %vm2167_vm0, %v2168_v1  ;;  %v1858_v10 = vpack.c.bf16 %v884_v9, %v883_v7  ;;  %v1056_v9 = vld [vmem:[#allocation7 + $0x158] sm:$0xff] }
 0x1cd   : > { %1827 = vmatprep.subr.bf16.mxu1 %v2166_v0  ;;  %v855_v0 = vld [vmem:[#allocation7 + $0x10] sm:$0xff] }
 0x1ce   : > { %v1866_v24 = vpack.c.bf16 %v856_v23, %v855_v0 }
 0x1d0   : > { %1829 = vmatpush3.bf16.msra.mxu1 %v1828_v15  ;;  %1867 = vmatprep.subr.bf16.mxu0 %v1866_v24 }
 0x1d1   : > { %1869 = vmatpush3.bf16.msra.mxu0 %v1866_v24  ;;  %1831 = vmatprep.subr.bf16.mxu1 %v1830_v41 }
 0x1d2   : > { %1871 = vmatprep.subr.bf16.mxu0 %v1870_v27 }
 0x1d3   : > { %1636 = vmatmul.mubr.f32.vlgmr.msra.gmra.mrb[6].mxu1 %v712_v49  ;;  %v1045_v49 = vld [vmem:[#allocation7 + $0x100] sm:$0xff] }
 0x1d4   : > { %1638 = vmatprep.mubr.msk.f32.mxu1 %vm2167_vm0, %v2168_v1  ;;  %1833 = vmatpush3.bf16.msra.mxu1 %v1830_v41  ;;  %v2458_v53 = vpack.c.bf16 %v1046_v50, %v1045_v49  ;;  %v1049_v49 = vld [vmem:[#allocation7 + $0x120] sm:$0xff]  ;;  %v1050_v50 = vld [vmem:[#allocation7 + $0x128] sm:$0xff] }
 0x1d5   : > { %1873 = vmatpush3.bf16.msra.mxu0 %v1870_v27  ;;  %1835 = vmatprep.subr.bf16.mxu1 %v1834_v48  ;;  %v1902_v59 = vpack.c.bf16 %v1050_v50, %v1049_v49 }
 0x1d6   : > { %1875 = vmatprep.subr.bf16.mxu0 %v1874_v30 }
 0x1d7   : > { %1639 = vmatmul.mubr.f32.gmra.mrb[8].mxu1 %v714_v17 }
 0x1d8   : > { %1641 = vmatprep.mubr.msk.f32.mxu1 %vm2167_vm0, %v2168_v1  ;;  %v861_v1 = vld [vmem:[#allocation7 + $0x40] sm:$0xff]  ;;  %1837 = vmatpush3.bf16.msra.mxu1 %v1834_v48 }
 0x1d9   : > { %1877 = vmatpush3.bf16.msra.mxu0 %v1874_v30  ;;  %v1878_v32 = vpack.c.bf16 %v862_v31, %v861_v1  ;;  %1839 = vmatprep.subr.bf16.mxu1 %v1838_v54  ;;  %v823_v1 = vadd.s32 4294967295, %v2410_v20 }
 0x1db   : > { %1642 = vmatmul.mubr.f32.gmra.mrb[10].mxu1 %v713_v16  ;;  %1879 = vmatprep.subr.bf16.mxu0 %v1878_v32  ;;  %vm826_vm11 = vcmp.ge.s32.totalorder %v823_v1, 0 }
 0x1dc   : > { %1841 = vmatpush3.bf16.msra.mxu1 %v1838_v54 }
 0x1dd   : > { %1881 = vmatpush3.bf16.msra.mxu0 %v1878_v32  ;;  %1843 = vmatprep.subr.bf16.mxu1 %v1842_v57 }
 0x1de   : > { %1883 = vmatprep.subr.bf16.mxu0 %v1882_v35 }
 0x1e0   : > { %1845 = vmatpush3.bf16.msra.mxu1 %v1842_v57 }
 0x1e1   : > { %1885 = vmatpush3.bf16.msra.mxu0 %v1882_v35  ;;  %1847 = vmatprep.subr.bf16.mxu1 %v1846_v60 }
 0x1e2   : > { %1887 = vmatprep.subr.bf16.mxu0 %v1886_v40 }
 0x1e4   : > { %1849 = vmatpush3.bf16.msra.mxu1 %v1846_v60  ;;  %v1051_v60 = vld [vmem:[#allocation7 + $0x130] sm:$0xff] }
 0x1e5   : > { %1889 = vmatpush3.bf16.msra.mxu0 %v1886_v40  ;;  %1851 = vmatprep.subr.bf16.mxu1 %v1850_v63 }
 0x1e6   : > { %1891 = vmatprep.subr.bf16.mxu0 %v1890_v47 }
 0x1e8   : > { %1853 = vmatpush3.bf16.msra.mxu1 %v1850_v63  ;;  %v1906_v63 = vpack.c.bf16 %v1052_v61, %v1051_v60 }
 0x1e9   : > { %1893 = vmatpush3.bf16.msra.mxu0 %v1890_v47  ;;  %1855 = vmatprep.subr.bf16.mxu1 %v1854_v8  ;;  %v1898_v47 = vpack.c.bf16 %v1048_v39, %v1047_v38 }
 0x1ea   : > { %1895 = vmatprep.subr.bf16.mxu0 %v2458_v53 }
 0x1ec   : > { %1857 = vmatpush3.bf16.msra.mxu1 %v1854_v8  ;;  %v1055_v8 = vld [vmem:[#allocation7 + $0x150] sm:$0xff] }
 0x1ed   : > { %1859 = vmatprep.subr.bf16.mxu1 %v1858_v10 }
 0x1f0   : > { %1861 = vmatpush3.bf16.msra.mxu1 %v1858_v10 }
 0x1f1   : > { %1749 = vmatprep.subr.msk.mxu1 %vm358_vm1, %v2464_v11 }
 0x27e   : > { %v680_v12 = vpop.f32.mrb[6].mxu0 }
 0x27f   : > { %v1596_v13 = vpop.f32.mrb[7].mxu0 }
 0x280   : > { %v1057_v13 = vld [vmem:[#allocation7 + $0x160] sm:$0xff] }
 0x282   : > { %v685_v14 = vpop.f32.mrb[8].mxu0 }
 0x283   : > { %v1599_v15 = vpop.f32.mrb[9].mxu0 }
 0x284   : > { %v1059_v15 = vld [vmem:[#allocation7 + $0x170] sm:$0xff] }
 0x285   : > { %v600_v16 = vpop.f32.mrb[0].mxu1 }
 0x286   : > { %v681_v17 = vadd.f32 %v680_v12, %v600_v16  ;;  %v1555_v18 = vpop.f32.mrb[1].mxu1  ;;  %v1914_v12 = vpack.c.bf16 %v1056_v9, %v1055_v8  ;;  %v1060_v16 = vld [vmem:[#allocation7 + $0x178] sm:$0xff] }
 0x287   : > { %v1160_v18 = vrot.slane %v2352_v3, 3 }
 0x297   : > { %v690_v19 = vpop.f32.mrb[10].mxu0 }
 0x298   : > { %v1602_v21 = vpop.f32.mrb[11].mxu0 }
 0x29a   : > { %v605_v0 = vpop.f32.mrb[2].mxu1 }
 0x29b   : > { %v686_v23 = vadd.f32 %v685_v14, %v605_v0  ;;  %v1558_v24 = vpop.f32.mrb[3].mxu1  ;;  %v1058_v14 = vld [vmem:[#allocation7 + $0x168] sm:$0xff]  ;;  %v1162_v0 = vrot.slane %v2354_v4, 3 }
 0x29c   : > { %v1918_v44 = vpack.c.bf16 %v1058_v14, %v1057_v13 }
 0x29e   : > { %v610_v25 = vpop.f32.mrb[4].mxu1 }
 0x29f   : > { %v691_v26 = vadd.f32 %v690_v19, %v610_v25  ;;  %v1561_v27 = vpop.f32.mrb[5].mxu1 }
 0x2a6   : > { %v784_v30 = vpop.f32.mrb[6].mxu1 }
 0x2a7   : > { %v798_v31 = vadd.f32 %v784_v30, %v681_v17  ;;  %v1637_v32 = vpop.f32.mrb[7].mxu1  ;;  %v1159_v17 = vrot.slane %v2350_v2, 3  ;;  %v1163_v2 = vsel %vm1158_vm13, %v1160_v18, %v1162_v0 }
 0x2a9   : > { %v805_v33 = vadd.f32 %v804_v29, %v798_v31  ;;  %v1161_v25 = vsel %vm1158_vm13, %v1159_v17, %v1160_v18 }
 0x2aa   : > { %v789_v34 = vpop.f32.mrb[8].mxu1 }
 0x2ab   : > { %v808_v35 = vmax.f32 %v805_v33, 0.0  ;;  %v799_v36 = vadd.f32 %v789_v34, %v686_v23  ;;  %v1640_v37 = vpop.f32.mrb[9].mxu1  ;;  %v1922_v23 = vpack.c.bf16 %v1060_v16, %v1059_v15 }
 0x2ad   : > { %v844_v40 = vsel %vm826_vm11, %v808_v35, 0.0  ;;  %v806_v41 = vadd.f32 %v804_v29, %v799_v36  ;;  %2017 = vmatprep.mubr.msk.f32.mxu0 %vm826_vm11, %v808_v35 }
 0x2ae   : > { %v794_v42 = vpop.f32.mrb[10].mxu1  ;;  %v888_v48 = vrot.slane %v844_v40, 1  ;;  %v1061_v52 = vrot.slane %v844_v40, 2 }
 0x2af   : > { %v2471_v43 = vmax.f32 %v806_v41, 0.0  ;;  %v800_v45 = vadd.f32 %v794_v42, %v691_v26  ;;  %v1643_v46 = vpop.f32.mrb[11].mxu1  ;;  %v1156_v26 = vsub.s32 3, %v2410_v20 }
 0x2b1   : > { %v807_v51 = vadd.f32 %v804_v29, %v800_v45  ;;  %1712 = vmatmul.mubr.f32.vlgmr.msra.gmra.mrb[12].mxu0 %v2471_v43  ;;  %v889_v54 = vrot.slane %v2471_v43, 1  ;;  %v1062_v55 = vrot.slane %v2471_v43, 2  ;;  %v1147_v29 = vsub.s32 2, %v2410_v20 }
 0x2b2   : > { %1897 = vmatpush3.bf16.msra.mxu0 %v2458_v53  ;;  %v1910_v53 = vpack.c.bf16 %v1054_v6, %v1053_v5 }
 0x2b3   : > { %v810_v56 = vmax.f32 %v807_v51, 0.0  ;;  %v890_v57 = vsel %vm304_vm2, %v888_v48, %v889_v54  ;;  %1899 = vmatprep.subr.bf16.mxu0 %v1898_v47  ;;  %v1063_v58 = vsel %vm319_vm3, %v1061_v52, %v1062_v55  ;;  %v1148_v31 = vrot.slane %v2416_v22, %v1147_v29 }
 0x2b4   : > { %1676 = vmatprep.mubr.f32.mxu1 %v890_v57  ;;  %1746 = vmatprep.mubr.f32.mxu0 %v1063_v58 }
 0x2b5   : > { %813 = vst [vmem:[#allocation3 + $0x10] sm:$0x3] %v810_v56 }
 0x2b6   : > { %1901 = vmatpush3.bf16.msra.mxu0 %v1898_v47 }
 0x2b7   : > { %1903 = vmatprep.subr.bf16.mxu0 %v1902_v59 }
 0x2ba   : > { %1905 = vmatpush3.bf16.msra.mxu0 %v1902_v59 }
 0x2bb   : > { %1907 = vmatprep.subr.bf16.mxu0 %v1906_v63 }
 0x2bc   : > { %v837_v7 = vld [vmem:[#allocation3 + $0x10] sm:$0x3] }
 0x2bd   : > { %v846_v10 = vsel %vm831_vm12, %v837_v7, 0.0 }
 0x2be   : > { %849 = vst [vmem:[#allocation3 + $0x10] sm:$0x3] %v846_v10  ;;  %1909 = vmatpush3.bf16.msra.mxu0 %v1906_v63 }
 0x2bf   : > { %1911 = vmatprep.subr.bf16.mxu0 %v1910_v53 }
 0x2c2   : > { %1913 = vmatpush3.bf16.msra.mxu0 %v1910_v53 }
 0x2c3   : > { %1915 = vmatprep.subr.bf16.mxu0 %v1914_v12 }
 0x2c5   : > { %v852_v19 = vld [vmem:[#allocation3 + $0x10] sm:$0x3] }
 0x2c6   : > { %v891_v21 = vrot.slane %v852_v19, 1  ;;  %1917 = vmatpush3.bf16.msra.mxu0 %v1914_v12  ;;  %v1064_v3 = vrot.slane %v852_v19, 2 }
 0x2c7   : > { %1919 = vmatprep.subr.bf16.mxu0 %v1918_v44 }
 0x2c8   : > { %v892_v24 = vsel %vm304_vm2, %v889_v54, %v891_v21  ;;  %v1065_v4 = vsel %vm319_vm3, %v1062_v55, %v1064_v3 }
 0x2c9   : > { %1677 = vmatmul.mubr.f32.vlgmr.msra.gmra.mrb[12].mxu1 %v892_v24 }
 0x2ca   : > { %1921 = vmatpush3.bf16.msra.mxu0 %v1918_v44  ;;  %1750 = vmatpush3.msk.msra.mxu1 %vm358_vm1, %v2464_v11  ;;  %v1157_v11 = vrot.slane %v2416_v22, %v1156_v26 }
 0x2cb   : > { %1923 = vmatprep.subr.bf16.mxu0 %v1922_v23  ;;  %1751 = vmatprep.mubr.msk.f32.mxu1 %vm334_vm6, %v1161_v25 }
 0x2cd   : > { %1752 = vmatmul.mubr.msk.f32.vlgmr.msra.gmra.mrb[14].mxu1 %vm334_vm6, %v1163_v2 }
 0x2ce   : > { %1925 = vmatpush3.bf16.msra.mxu0 %v1922_v23 }
 0x2d1   : > { %1747 = vmatmul.mubr.f32.vlgmr.msra.gmra.mrb[12].mxu0 %v1065_v4 }
 0x39c   : > { %v1678_v27 = vpop.f32.mrb[12].mxu1 }
 0x39d   : > { %v961_v28 = vpop.f32.mrb[13].mxu1 }
 0x3a0   : > { %v1753_v30 = vpop.f32.mrb[14].mxu1 }
 0x3a1   : > { %v1237_v1 = vpop.f32.mrb[15].mxu1  ;;  %v1243_v32 = vadd.f32 %v1753_v30, %v1157_v11 }
 0x3a2   : > { %v1238_v34 = vadd.f32 %v1237_v1, %v1157_v11 }
 0x3a3   : > { %v1247_v39 = vmax.f32 %v1243_v32, 0.0 }
 0x3a4   : > { %v1748_v33 = vpop.f32.mrb[12].mxu0  ;;  %v1246_v20 = vmax.f32 %v1238_v34, 0.0 }
 0x3a5   : > { %v1926_v35 = vadd.f32 %v1748_v33, %v1678_v27  ;;  %v1134_v36 = vpop.f32.mrb[13].mxu0 }
 0x3a6   : > { %v1927_v37 = vadd.f32 %v1134_v36, %v961_v28 }
 0x3a7   : > { %v1150_v38 = vadd.f32 %v1926_v35, %v1148_v31 }
 0x3a8   : > { %v1149_v40 = vadd.f32 %v1927_v37, %v1148_v31 }
 0x3a9   : > { %v1152_v41 = vmax.f32 %v1150_v38, 0.0 }
 0x3aa   : > { %v1151_v42 = vmax.f32 %v1149_v40, 0.0 }
 0x3ab   : > { %v1249_v43 = vadd.f32 %v1247_v39, %v1152_v41 }
 0x3ac   : > { %v1248_v22 = vadd.f32 %v1246_v20, %v1151_v42 }
 0x3ad   : > { %1251 = vst [vmem:[%s288_s11 + $0x8] sm:$0xff] %v1249_v43 }
 0x3ae   : > { %1250 = vst [vmem:[%s288_s11] sm:$0xff] %v1248_v22 }
 0x3af   : > { %2087 = shalt.err (!%p2084_p6)
}
 0x3b0   : > { %s2088_s13 = scalar_lea.hbm %s2500_s19, 256  ;;  %s2092_s29 = scalar_lea.hbm %s2555_s6, 512 }
 0x3b1   : > { %p2089_p7 = scmp.ne.s32.totalorder %s2500_s19, %s2088_s13  ;;  %p2093_p0 = scmp.lt.u32.totalorder %s2500_s19, %s2555_s6 }
 0x3b2   : > { %p2094_p4 = scmp.lt.u32.totalorder %s2092_s29, %s2088_s13  ;;  %p2096_p13 = scmp.lt.u32.totalorder %s2088_s13, %s2500_s19 }
 0x3b3   : > { %p2090_p9 = pnand %p2089_p7, %p2571_p8 }
 0x3b4   : > { %p2095_p1 = por %p2094_p4, %p2093_p0 }
 0x3b5   : > { %p2091_p12 = pneg %p2090_p9 }
 0x3b6   : > { %p2097_p10 = por %p2096_p13, %p2095_p1 }
 0x3b8   : > { %p2098_p11 = pnand %p2097_p10, %p2091_p12 }
 0x3ba   : > { %2101 = shalt.err (!%p2098_p11)
}
 0x3bb   : > { %s2173_s17 = smov 128  }
 0x3bc   : > { %1939 = dma.vmem_to_hbm [thread:$0]  (%p2571_p8), %s2495_s12, 256, %s2500_s19, %s2502_s20, %s2173_s17, %s2173_s17, %s2171_s30  }
 0x3bd PF: > { %p1956_p2 = scmp.ge.s32.totalorder %s2160_s26, 2  ;;  %s1283_s16 = sand.u32 1, %s2140_s21  }
 0x3be   : > { %p2572_p3 = scmp.ne.s32.totalorder %s2565_s9, 0  ;;  %s1284_s18 = scalar_lea.sflag [#allocation6], %s1283_s16 }
 0x3c0   : > { %p1949_p5 = pnand %p1956_p2, %p2572_p3 }
 0x3c2   : > { %2135 = dma.done.wait (!%p1949_p5), %s1284_s18, 256  }
 0x3c3   : > { %2137 = vsyncadd (!%p1949_p5), %s1284_s18, 4294967040  ;;  %s21_s26 = sadd.s32 1, %s2160_s26   ;;  %s2573_s24 = sld [smem:[#allocation13_spill]] }
 0x3c4   : > { %p18_p6 = scmp.ge.s32.totalorder %s21_s26, 4   ;;  %s2574_s25 = sld [smem:[#allocation14_spill]] }
 0x3c5   : > { %s2575_s21 = smov %s2144_s22  ;;  %s2576_s22 = smov %s2148_s23 }
 0x3c6   : > { %s2577_s23 = smov %s2262_s10  ;;  %20 = sbr.rel (!%p18_p6) target bundleno = 6 (0x6), region = 97 }
 0x3cd   :  { %1289 = vsyncpa [#allocation5], 1 }
 0x3ce   :  { %1291 = vsyncpa [#allocation5 + $0x1], 1 }
 0x3cf   :  { %1292 = vsyncpa [#allocation8], 1 }
 0x3d0   :  { %1293 = vsyncpa [#allocation6], 1 }
 0x3d1   :  { %1295 = vsyncpa [#allocation6 + $0x1], 1 }

</bundles_post_ra>
